<compile_context>
chip_gen: v6e
topology: v6e:2x2x1
jax: 0.10.0
libtpu: 0.0.40
codegen_flags: <defaults>
</compile_context>

<pallas_src>
import functools

import jax
import jax.numpy as jnp
from jax.experimental import pallas as pl
from jax.experimental.pallas import tpu as pltpu


def _vmem_capacity_bytes():
    """Per-core VMEM capacity; conservative (v7x-safe) fallback if unknown."""
    try:
        cap = int(pltpu.get_tpu_info().vmem_capacity_bytes)
        if cap > 0:
            return cap
    except Exception:
        pass
    return 64 * 2**20


def attention_block_kernel(hist_ref, x_ref, w_ref, p_ref, o_ref, *, width):
    """One grid step computes T_BLK output timesteps.

    hist_ref: (1, width, B, H)  rows [t0-width, t0) of the sequence (block 0's
                                history is never used: those rows pass through)
    x_ref   : (T_BLK, B, H)     rows [t0, t0+T_BLK)
    w_ref   : (H, H)            weight_W
    p_ref   : (1, H)            weight_proj presented as a lane-dense row
    o_ref   : (T_BLK, B, H)     outputs for timesteps [t0, t0+T_BLK)
    """
    t_blk, B, H = x_ref.shape
    rows = t_blk + width

    x_cur = x_ref[...]                                      # (t_blk, B, H)
    xwin = jnp.concatenate([hist_ref[0], x_cur], axis=0)    # (rows, B, H)

    # U = tanh(X @ W): every unique row of the block projected exactly once
    # (one MXU matmul).  Native-dtype operands, f32 accumulation; HIGHEST
    # precision keeps the f32 path numerically aligned with the reference.
    u = jnp.tanh(
        jnp.dot(
            xwin.reshape(rows * B, H),
            w_ref[...],
            preferred_element_type=jnp.float32,
            precision=jax.lax.Precision.HIGHEST,
        )
    ).reshape(rows, B, H)

    # scores[r, b] = u[r, b, :] . weight_proj   (lane reduction) -> (rows, B)
    scores = jnp.sum(u * p_ref[...].astype(jnp.float32), axis=-1)

    # Legacy nn.Softmax() on the 2-D (width, B) score matrix normalizes over
    # dim=1 (batch), so the weight of sequence row r is independent of which
    # window it sits in: compute it once per row.  Exact division (no approx
    # reciprocal) for parity with the reference.
    m = jnp.max(scores, axis=1, keepdims=True)               # (rows, 1)
    e = jnp.exp(scores - m)                                  # (rows, B)
    sm = e / jnp.sum(e, axis=1, keepdims=True)               # (rows, B)

    # Weighted rows, then a width-tap sliding-window sum over the row axis.
    # xwin row r <-> global timestep t0 - width + r, so
    #   out[t_local] = sum_{j=0}^{width-1} y[t_local + j].
    y = sm[:, :, None] * xwin.astype(jnp.float32)            # (rows, B, H)
    att = y[0:t_blk]
    for j in range(1, width):
        att = att + y[j:j + t_blk]
    # TODO(synk): for attention_width >= ~8 replace the tap loop with a
    # row-axis cumulative sum + shifted difference.

    o_ref[...] = att.astype(o_ref.dtype)

    # The first `width` timesteps pass through unchanged; they all live in
    # block 0 because t_block >= width by construction.
    @pl.when(pl.program_id(0) == 0)
    def _():
        o_ref[0:width, :, :] = x_cur[0:width, :, :].astype(o_ref.dtype)


def attention_layer(inputs, weight_W, weight_proj, attention_width=3,
                    t_block=None):
    """Pallas wrapper. inputs: (T, B, H); returns (T, B, H)."""
    T, B, H = inputs.shape
    width = int(attention_width)

    if T <= width:
        return inputs  # module returns the sequence unchanged

    # NOTE: B should be a multiple of the sublane tile (8 for f32, 16 for
    # bf16) and H a multiple of 128 for lane-dense, relayout-free blocks.
    # TODO(synk): pad B/H in the wrapper for non-aligned shapes.

    elt = jnp.dtype(inputs.dtype).itemsize
    vmem_cap = _vmem_capacity_bytes()
    per_row = B * H * (4 * elt + 24)  # 2x-buffered in/out blocks + f32 temps

    if t_block is None:
        # DMA efficiency (~2 MiB per input block) and MXU fill (>=512 LHS
        # rows), clamped by a ~70%-of-VMEM budget, then capped so at least 2
        # blocks exist (feeds both v7x TensorCores) without over-padding
        # tiny sequences.
        t_dma = pl.cdiv(2 * 1024 * 1024, B * H * elt)
        t_mxu = pl.cdiv(512, B)
        cand = max(t_dma, t_mxu, 8)
        budget = int(0.70 * vmem_cap) - 4 * H * H * elt
        cand = min(cand, max(8, budget // per_row))
        cand = min(cand, max(8, pl.cdiv(T, 2)))
        t_block = max(8, (cand // 8) * 8)
    t_block = max(int(t_block), 8 * pl.cdiv(width, 8))  # keep width <= t_block

    num_blocks = pl.cdiv(T, t_block)
    T_pad = num_blocks * t_block
    # Tail padding only (< t_block rows; zero when t_block divides T).  Padded
    # rows feed only outputs that are sliced off below.
    x_pad = inputs if T_pad == T else jnp.pad(
        inputs, ((0, T_pad - T), (0, 0), (0, 0)))

    # `width` rows of history per block, gathered once in the wrapper.  This
    # replaces the previous duplicate full-block DMA of block i+1 (only
    # width-1 of its rows were ever read).  Block 0's history is clamped to
    # row 0; it only feeds passthrough rows, which the kernel overwrites.
    hist_idx = jnp.maximum(
        jnp.arange(num_blocks)[:, None] * t_block
        - width + jnp.arange(width)[None, :], 0)              # (nb, width)
    hist = inputs[hist_idx]                                   # (nb, width, B, H)

    proj_row = weight_proj.reshape(1, H)                      # lane-dense (1, H)

    # VMEM limit: enough for the chosen block, never above 75% of the per-core
    # capacity (v7x has only 64 MiB; v5e/v6e legitimately get a larger budget).
    need = per_row * t_block + 4 * H * H * elt + (1 << 20)
    vmem_limit = int(min(0.75 * vmem_cap, max(32 * 2**20, int(1.25 * need))))

    kernel = functools.partial(attention_block_kernel, width=width)
    out = pl.pallas_call(
        kernel,
        out_shape=jax.ShapeDtypeStruct((T_pad, B, H), inputs.dtype),
        grid=(num_blocks,),
        in_specs=[
            pl.BlockSpec((1, width, B, H), lambda i: (i, 0, 0, 0)),  # history
            pl.BlockSpec((t_block, B, H), lambda i: (i, 0, 0)),      # rows
            # NOTE: for large H on v7x, pipeline_mode=pl.Buffered(1) on this
            # constant-index weight block would avoid double-buffering it.
            pl.BlockSpec((H, H), lambda i: (0, 0)),                  # W
            pl.BlockSpec((1, H), lambda i: (0, 0)),                  # proj^T
        ],
        out_specs=pl.BlockSpec((t_block, B, H), lambda i: (i, 0, 0)),
        compiler_params=pltpu.CompilerParams(
            dimension_semantics=("parallel",),   # blocks are independent
            vmem_limit_bytes=vmem_limit,
        ),
    )(hist, x_pad, weight_W, proj_row)

    # Outputs land directly at their final timestep positions (no concatenate);
    # only the zero-padded tail (if any) is sliced off.
    return out if T_pad == T else out[:T]


def attention_layer_reference(inputs, weight_W, weight_proj, attention_width=3):
    """Pure-JAX reference matching the PyTorch forward exactly (f32 matmuls)."""
    T, B, H = inputs.shape
    hp = jax.lax.Precision.HIGHEST
    outs = []
    for i in range(T):
        if i < attention_width:
            outs.append(inputs[i])
        else:
            vec = inputs[i - attention_width:i]                        # (w,B,H)
            u = jnp.tanh(jnp.einsum('wbh,hk->wbk', vec, weight_W,
                                    precision=hp))                     # (w,B,H)
            a = jnp.einsum('wbh,hk->wbk', u, weight_proj,
                           precision=hp)[:, :, 0]                      # (w,B)
            a = jax.nn.softmax(a, axis=1)   # legacy nn.Softmax() -> dim=1
            outs.append(jnp.sum(a[:, :, None] * vec, axis=0))          # (B,H)
    return jnp.stack(outs, axis=0)


if __name__ == "__main__":
    T, B, H = 8, 8, 128  # small shapes; (B, H) tile-aligned to (8, 128)

    key = jax.random.PRNGKey(0)
    k_w, k_p, k_x = jax.random.split(key, 3)
    # nn.Parameter(...).uniform_(-0.1, 0.1) equivalents, deterministic:
    weight_W = jax.random.uniform(k_w, (H, H), jnp.float32, -0.1, 0.1)
    weight_proj = jax.random.uniform(k_p, (H, 1), jnp.float32, -0.1, 0.1)
    x = jax.random.normal(k_x, (T, B, H), dtype=jnp.float32)

    out = attention_layer(x, weight_W, weight_proj, attention_width=3)
    out = jax.block_until_ready(out)

    ref = attention_layer_reference(x, weight_W, weight_proj, attention_width=3)
    max_err = float(jnp.max(jnp.abs(out - ref)))
    if not jnp.allclose(out, ref, atol=2e-3, rtol=2e-3):
        raise AssertionError(
            f"Pallas kernel does not match reference (max abs err {max_err:.3e})")
    print("KERNEL_OK")
</pallas_src>

<mosaic_0001>
module attributes {stable_mosaic.version = 11 : i64} {
  func.func @attention_block_kernel(%arg0: i32, %arg1: memref<1x3x8x128xf32, #tpu.memory_space<vmem>>, %arg2: memref<8x8x128xf32, #tpu.memory_space<vmem>>, %arg3: memref<128x128xf32, #tpu.memory_space<vmem>>, %arg4: memref<1x128xf32, #tpu.memory_space<vmem>>, %arg5: memref<8x8x128xf32, #tpu.memory_space<vmem>>) attributes {dimension_semantics = [#tpu.dimension_semantics<parallel>], iteration_bounds = array<i64: 1>, scalar_prefetch = 0 : i64, scratch_operands = 0 : i64, tpu.core_type = #tpu.core_type<tc>, window_params = [{transform_indices = @transform_0, window_bounds = array<i64: 1, 3, 8, 128>}, {transform_indices = @transform_1, window_bounds = array<i64: 8, 8, 128>}, {pipeline_mode = #tpu.pipeline_mode<synchronous>, transform_indices = @transform_2, window_bounds = array<i64: 128, 128>}, {pipeline_mode = #tpu.pipeline_mode<synchronous>, transform_indices = @transform_3, window_bounds = array<i64: 1, 128>}, {transform_indices = @transform_4, window_bounds = array<i64: 8, 8, 128>}]} {
    %c0 = arith.constant 0 : index
    %c0_0 = arith.constant 0 : index
    %c0_1 = arith.constant 0 : index
    %0 = vector.load %arg2[%c0, %c0_0, %c0_1] : memref<8x8x128xf32, #tpu.memory_space<vmem>>, vector<8x8x128xf32>
    %c0_2 = arith.constant 0 : index
    %c0_3 = arith.constant 0 : index
    %c0_4 = arith.constant 0 : index
    %c0_5 = arith.constant 0 : index
    %1 = vector.load %arg1[%c0_2, %c0_3, %c0_4, %c0_5] : memref<1x3x8x128xf32, #tpu.memory_space<vmem>>, vector<1x3x8x128xf32>
    %2 = vector.shape_cast %1 : vector<1x3x8x128xf32> to vector<3x8x128xf32>
    %3 = tpu.concatenate %2, %0 in 0 : vector<3x8x128xf32>, vector<8x8x128xf32> -> vector<11x8x128xf32>
    %4 = vector.shape_cast %3 : vector<11x8x128xf32> to vector<88x128xf32>
    %c0_6 = arith.constant 0 : index
    %c0_7 = arith.constant 0 : index
    %5 = vector.load %arg3[%c0_6, %c0_7] : memref<128x128xf32, #tpu.memory_space<vmem>>, vector<128x128xf32>
    %cst = arith.constant dense<0.000000e+00> : vector<88x128xf32>
    %6 = tpu.matmul %4, %5, %cst {dimension_numbers = #tpu.dot_dimension_numbers<[1], [0], [0], [1], [0, 0, 1, 1], [], []>, precision = #tpu.contract_precision<fp32>} : vector<88x128xf32>, vector<128x128xf32>, vector<88x128xf32> -> vector<88x128xf32>
    %7 = math.tanh %6 : vector<88x128xf32>
    %8 = vector.shape_cast %7 : vector<88x128xf32> to vector<11x8x128xf32>
    %c0_8 = arith.constant 0 : index
    %c0_9 = arith.constant 0 : index
    %9 = vector.load %arg4[%c0_8, %c0_9] : memref<1x128xf32, #tpu.memory_space<vmem>>, vector<1x128xf32>
    %10 = vector.shape_cast %9 : vector<1x128xf32> to vector<1x1x128xf32>
    %11 = vector.broadcast %10 : vector<1x1x128xf32> to vector<11x8x128xf32>
    %12 = arith.mulf %8, %11 : vector<11x8x128xf32>
    %cst_10 = arith.constant dense<0.000000e+00> : vector<11x8xf32>
    %13 = vector.multi_reduction <add>, %12, %cst_10 [2] : vector<11x8x128xf32> to vector<11x8xf32>
    %cst_11 = arith.constant dense<0xFF800000> : vector<11xf32>
    %14 = vector.multi_reduction <maximumf>, %13, %cst_11 [1] : vector<11x8xf32> to vector<11xf32>
    %15 = vector.shape_cast %14 : vector<11xf32> to vector<11x1xf32>
    %16 = vector.broadcast %15 : vector<11x1xf32> to vector<11x8xf32>
    %17 = arith.subf %13, %16 : vector<11x8xf32>
    %18 = math.exp %17 : vector<11x8xf32>
    %cst_12 = arith.constant dense<0.000000e+00> : vector<11xf32>
    %19 = vector.multi_reduction <add>, %18, %cst_12 [1] : vector<11x8xf32> to vector<11xf32>
    %20 = vector.shape_cast %19 : vector<11xf32> to vector<11x1xf32>
    %21 = vector.broadcast %20 : vector<11x1xf32> to vector<11x8xf32>
    %22 = arith.divf %18, %21 : vector<11x8xf32>
    %23 = vector.shape_cast %22 : vector<11x8xf32> to vector<11x8x1xf32>
    %24 = vector.broadcast %23 : vector<11x8x1xf32> to vector<11x8x128xf32>
    %25 = arith.mulf %24, %3 : vector<11x8x128xf32>
    %26 = vector.extract_strided_slice %25 {offsets = [0, 0, 0], sizes = [8, 8, 128], strides = [1, 1, 1]} : vector<11x8x128xf32> to vector<8x8x128xf32>
    %27 = vector.extract_strided_slice %25 {offsets = [1, 0, 0], sizes = [8, 8, 128], strides = [1, 1, 1]} : vector<11x8x128xf32> to vector<8x8x128xf32>
    %28 = arith.addf %26, %27 : vector<8x8x128xf32>
    %29 = vector.extract_strided_slice %25 {offsets = [2, 0, 0], sizes = [8, 8, 128], strides = [1, 1, 1]} : vector<11x8x128xf32> to vector<8x8x128xf32>
    %30 = arith.addf %28, %29 : vector<8x8x128xf32>
    %c0_13 = arith.constant 0 : index
    %c0_14 = arith.constant 0 : index
    %c0_15 = arith.constant 0 : index
    %31 = vector.load %arg5[%c0_13, %c0_14, %c0_15] : memref<8x8x128xf32, #tpu.memory_space<vmem>>, vector<8x8x128xf32>
    tpu.vector_store %arg5[%c0_13, %c0_14, %c0_15], %30 {strides = array<i32>} : memref<8x8x128xf32, #tpu.memory_space<vmem>>, vector<8x8x128xf32>,
    %c0_i32 = arith.constant 0 : i32
    %32 = arith.cmpi eq, %arg0, %c0_i32 : i32
    %33 = arith.extui %32 : i1 to i32
    %c0_i32_16 = arith.constant 0 : i32
    %34 = arith.cmpi ne, %33, %c0_i32_16 : i32
    scf.if %34 {
      %35 = vector.extract_strided_slice %0 {offsets = [0, 0, 0], sizes = [3, 8, 128], strides = [1, 1, 1]} : vector<8x8x128xf32> to vector<3x8x128xf32>
      %c0_17 = arith.constant 0 : index
      %c0_18 = arith.constant 0 : index
      %c0_19 = arith.constant 0 : index
      %36 = vector.load %arg5[%c0_17, %c0_18, %c0_19] : memref<8x8x128xf32, #tpu.memory_space<vmem>>, vector<3x8x128xf32>
      tpu.vector_store %arg5[%c0_17, %c0_18, %c0_19], %35 {strides = array<i32>} : memref<8x8x128xf32, #tpu.memory_space<vmem>>, vector<3x8x128xf32>,
    } else {
    }
    return
  }
  func.func @transform_0(%arg0: i32) -> (i32, i32, i32, i32) {
    %c0_i32 = arith.constant 0 : i32
    %c0_i32_0 = arith.constant 0 : i32
    %c0_i32_1 = arith.constant 0 : i32
    %c0_i32_2 = arith.constant 0 : i32
    return %arg0, %c0_i32, %c0_i32_0, %c0_i32_1 : i32, i32, i32, i32
  }
  func.func @transform_1(%arg0: i32) -> (i32, i32, i32) {
    %c0_i32 = arith.constant 0 : i32
    %c0_i32_0 = arith.constant 0 : i32
    %c0_i32_1 = arith.constant 0 : i32
    return %arg0, %c0_i32, %c0_i32_0 : i32, i32, i32
  }
  func.func @transform_2(%arg0: i32) -> (i32, i32) {
    %c0_i32 = arith.constant 0 : i32
    %c0_i32_0 = arith.constant 0 : i32
    %c0_i32_1 = arith.constant 0 : i32
    return %c0_i32, %c0_i32_0 : i32, i32
  }
  func.func @transform_3(%arg0: i32) -> (i32, i32) {
    %c0_i32 = arith.constant 0 : i32
    %c0_i32_0 = arith.constant 0 : i32
    %c0_i32_1 = arith.constant 0 : i32
    return %c0_i32, %c0_i32_0 : i32, i32
  }
  func.func @transform_4(%arg0: i32) -> (i32, i32, i32) {
    %c0_i32 = arith.constant 0 : i32
    %c0_i32_0 = arith.constant 0 : i32
    %c0_i32_1 = arith.constant 0 : i32
    return %arg0, %c0_i32, %c0_i32_0 : i32, i32, i32
  }
}

</mosaic_0001>

<bundles_post_ra>
// kernel: tpu_custom_call.1
= control target key start
LH: loop header
LB: loop body
LE: loop exit
PB: predicated region body
PF: predicated region fallthrough
CT: control target
= control target key end

     0   :  { %9 = vsyncpa [#allocation3], 0  ;;  %s3344_s0 = inlined_call_operand.hbm [shape: f32[1,3,8,128], index: 0, kind: input, shape index: {}]   ;;  %s3345_s1 = inlined_call_operand.hbm [shape: f32[8,8,128], index: 1, kind: input, shape index: {}]   ;;  %s3346_s2 = inlined_call_operand.hbm [shape: f32[128,128], index: 2, kind: input, shape index: {}]   ;;  %s3347_s3 = inlined_call_operand.vmem [shape: f32[1,128], index: 3, kind: input, shape index: {}]   ;;  %s3348_s4 = inlined_call_operand.hbm [shape: f32[8,8,128], index: 4, kind: output, shape index: {}]  }
   0x1   :  { %10 = vsyncpa [#allocation6], 0 }
   0x2   :  { %11 = vsyncpa [#allocation4], 0  ;;  %s2388_s15 = smov [#allocation5]   ;;  %s2389_s17 = smov [#allocation2]  }
   0x3   :  { %s29_s16 = sshll.u32 %s2388_s15, 4  ;;  %s17_s18 = sshll.u32 %s2389_s17, 4  ;;  %s30_s16 = int_to_ptr.vmem [resolvable:$true] %s29_s16  ;;  %s18_s18 = int_to_ptr.vmem [resolvable:$true] %s17_s18 }
   0x4   :  { %s2310_s19 = scalar_lea.vmem %s30_s16, 1024  ;;  %p2315_p1 = scmp.lt.s32.totalorder %s30_s16, %s30_s16 }
   0x5   :  { %p2311_p0 = scmp.ne.s32.totalorder %s30_s16, %s2310_s19  ;;  %p2316_p2 = scmp.lt.s32.totalorder %s2310_s19, %s2310_s19 }
   0x7   :  { %p2317_p3 = por %p2316_p2, %p2315_p1 }
   0x9   :  { %p2318_p4 = pnand %p2317_p3, %p2311_p0 }
   0xb   :  { %2321 = shalt.err (!%p2318_p4)
}
   0xc   :  { %s2390_s20 = smov 128   ;;  %s2391_s21 = smov 8  }
   0xd   :  { %35 = dma.hbm_to_vmem [thread:$0]  %s3345_s1, 1024, %s30_s16, [#allocation6], %s2390_s20, %s2390_s20, %s2391_s21  }
   0xe   :  { %s2330_s24 = scalar_lea.vmem %s18_s18, 384  ;;  %p2335_p6 = scmp.lt.s32.totalorder %s18_s18, %s18_s18 }
   0xf   :  { %p2331_p5 = scmp.ne.s32.totalorder %s18_s18, %s2330_s24  ;;  %p2336_p7 = scmp.lt.s32.totalorder %s2330_s24, %s2330_s24 }
  0x11   :  { %p2337_p8 = por %p2336_p7, %p2335_p6 }
  0x13   :  { %p2338_p9 = pnand %p2337_p8, %p2331_p5 }
  0x15   :  { %2341 = shalt.err (!%p2338_p9)
}
  0x16   :  { %23 = dma.hbm_to_vmem [thread:$0]  %s3344_s0, 384, %s18_s18, [#allocation3], %s2390_s20, %s2390_s20, %s2391_s21  }
  0x17   :  { %s2392_s27 = smov [#allocation7]  }
  0x18   :  { %s41_s28 = sshll.u32 %s2392_s27, 4  ;;  %s42_s28 = int_to_ptr.vmem [resolvable:$true] %s41_s28 }
  0x19   :  { %s2350_s29 = scalar_lea.vmem %s42_s28, 2048  ;;  %p2355_p11 = scmp.lt.s32.totalorder %s42_s28, %s42_s28 }
  0x1a   :  { %p2351_p10 = scmp.ne.s32.totalorder %s42_s28, %s2350_s29  ;;  %p2356_p12 = scmp.lt.s32.totalorder %s2350_s29, %s2350_s29 }
  0x1c   :  { %p2357_p13 = por %p2356_p12, %p2355_p11 }
  0x1e   :  { %p2358_p0 = pnand %p2357_p13, %p2351_p10 }
  0x20   :  { %2361 = shalt.err (!%p2358_p0)
}
  0x21   :  { %47 = dma.hbm_to_vmem [thread:$0]  %s3346_s2, 2048, %s42_s28, [#allocation6], %s2390_s20, %s2390_s20, %s2391_s21  }
  0x22   :  { %2382 = dma.done.wait [#allocation3], 384  }
  0x23   :  { %2383 = vsyncadd [#allocation3], 4294966912 }
  0x24   :  { %2384 = dma.done.wait [#allocation6], 3072  }
  0x25   :  { %2385 = vsyncadd [#allocation6], 4294964224  ;;  %v2393_v0 = vmov 0.0   ;;  %vm2394_vm0 = vmmov 0   ;;  %v85_v1 = vld [vmem:[#allocation7 + $0x78] sm:$0xff]  ;;  %v84_v2 = vld [vmem:[#allocation7 + $0x70] sm:$0xff] }
  0x26   :  { %1830 = vmatprep.subr.mxu0 %v2393_v0  ;;  %1895 = vmatprep.subr.mxu1 %v2393_v0  ;;  %v83_v3 = vld [vmem:[#allocation7 + $0x68] sm:$0xff]  ;;  %v2446_v4 = vand.u32 4294901760, %v85_v1  ;;  %v2448_v5 = vand.u32 4294901760, %v84_v2  ;;  %v82_v7 = vld [vmem:[#allocation7 + $0x60] sm:$0xff]  ;;  %v81_v8 = vld [vmem:[#allocation7 + $0x58] sm:$0xff]  ;;  %vm1265_vm1 = vcmask 1041409  }
  0x27   :  { %1862 = vmatprep.mubr.msk.f32.mxu0 %vm2394_vm0, %v2393_v0  ;;  %1927 = vmatprep.mubr.msk.f32.mxu1 %vm2394_vm0, %v2393_v0  ;;  %v2450_v6 = vand.u32 4294901760, %v83_v3  ;;  %v80_v9 = vld [vmem:[#allocation7 + $0x50] sm:$0xff]  ;;  %v2452_v10 = vand.u32 4294901760, %v82_v7  ;;  %v2454_v11 = vand.u32 4294901760, %v81_v8  ;;  %v79_v13 = vld [vmem:[#allocation7 + $0x48] sm:$0xff]  ;;  %v78_v14 = vld [vmem:[#allocation7 + $0x40] sm:$0xff] }
  0x28   :  { %v2456_v12 = vand.u32 4294901760, %v80_v9  ;;  %1831 = vmatpush3.msra.mxu0 %v2446_v4  ;;  %v2460_v15 = vsub.f32 %v85_v1, %v2446_v4  ;;  %v2463_v16 = vsub.f32 %v84_v2, %v2448_v5  ;;  %v2465_v17 = vand.u32 4294901760, %v79_v13  ;;  %v77_v19 = vld [vmem:[#allocation7 + $0x38] sm:$0xff]  ;;  %v76_v29 = vld [vmem:[#allocation7 + $0x30] sm:$0xff]  ;;  %v2491_v31 = vld [vmem:[#allocation5] sm:$0xff] }
  0x29   :  { %v2468_v18 = vsub.f32 %v83_v3, %v2450_v6  ;;  %1832 = vmatprep.subr.mxu0 %v2393_v0  ;;  %v2472_v20 = vsub.f32 %v82_v7, %v2452_v10  ;;  %v2475_v21 = vsub.f32 %v81_v8, %v2454_v11  ;;  %v2481_v25 = vand.u32 4294901760, %v78_v14  ;;  %v2506_v36 = vld [vmem:[#allocation5 + $0x8] sm:$0xff]  ;;  %v2508_v37 = vld [vmem:[#allocation5 + $0x10] sm:$0xff]  ;;  %1646 = vst [vmem:[#allocation8] sm:$0xff] %v2491_v31  ;;  %v74_v45 = vld [vmem:[#allocation7 + $0x20] sm:$0xff] }
  0x2a   :  { %1833 = vmatpush3.msra.mxu0 %v2448_v5  ;;  %v280_v22 = vand.u32 4294901760, %v2460_v15  ;;  %v287_v23 = vand.u32 4294901760, %v2463_v16  ;;  %v2485_v27 = vand.u32 4294901760, %v77_v19  ;;  %v2489_v30 = vsub.f32 %v80_v9, %v2456_v12  ;;  %v75_v39 = vld [vmem:[#allocation7 + $0x28] sm:$0xff]  ;;  %1647 = vst [vmem:[#allocation8 + $0x8] sm:$0xff] %v2506_v36  ;;  %1648 = vst [vmem:[#allocation8 + $0x10] sm:$0xff] %v2508_v37 }
  0x2b   :  { %v3368_v24 = vand.u32 4294901760, %v2468_v18  ;;  %1834 = vmatprep.subr.mxu0 %v2393_v0  ;;  %v3365_v26 = vand.u32 4294901760, %v2472_v20  ;;  %v3359_v28 = vand.u32 4294901760, %v2475_v21  ;;  %v2504_v35 = vsub.f32 %v79_v13, %v2465_v17  ;;  %v67_v51 = vld [vmem:[#allocation2] sm:$0xff]  ;;  %v73_v53 = vld [vmem:[#allocation7 + $0x18] sm:$0xff]  ;;  %v72_v57 = vld [vmem:[#allocation7 + $0x10] sm:$0xff] }
  0x2c   :  { %1835 = vmatpush3.msra.mxu0 %v2450_v6  ;;  %v281_v32 = vsub.f32 %v2460_v15, %v280_v22  ;;  %v288_v33 = vsub.f32 %v2463_v16, %v287_v23  ;;  %v3357_v38 = vand.u32 4294901760, %v2489_v30  ;;  %v2519_v43 = vand.u32 4294901760, %v76_v29  ;;  %v71_v1 = vld [vmem:[#allocation7 + $0x8] sm:$0xff]  ;;  %v68_v3 = vld [vmem:[#allocation2 + $0x8] sm:$0xff] }
  0x2d   :  { %v295_v34 = vsub.f32 %v2468_v18, %v3368_v24  ;;  %1836 = vmatprep.subr.mxu0 %v2393_v0  ;;  %v302_v42 = vsub.f32 %v2472_v20, %v3365_v26  ;;  %v309_v44 = vsub.f32 %v2475_v21, %v3359_v28  ;;  %v2526_v46 = vsub.f32 %v78_v14, %v2481_v25  ;;  %v70_v14 = vld [vmem:[#allocation7] sm:$0xff] }
  0x2e   :  { %1837 = vmatpush3.msra.mxu0 %v2452_v10  ;;  %v282_v40 = vand.u32 4294901760, %v281_v32  ;;  %v289_v41 = vand.u32 4294901760, %v288_v33  ;;  %v2529_v48 = vand.u32 4294901760, %v75_v39  ;;  %v3355_v49 = vand.u32 4294901760, %v2504_v35 }
  0x2f   :  { %1838 = vmatprep.subr.mxu0 %v2393_v0  ;;  %v296_v47 = vand.u32 4294901760, %v295_v34  ;;  %v2533_v50 = vsub.f32 %v77_v19, %v2485_v27  ;;  %v316_v52 = vsub.f32 %v2489_v30, %v3357_v38  ;;  %v303_v54 = vand.u32 4294901760, %v302_v42  ;;  %v69_v42 = vld [vmem:[#allocation2 + $0x10] sm:$0xff] }
  0x30   :  { %1839 = vmatpush3.msra.mxu0 %v2454_v11  ;;  %1896 = vmatpush3.msra.mxu1 %v282_v40  ;;  %v2541_v55 = vand.u32 4294901760, %v74_v45  ;;  %v3353_v56 = vand.u32 4294901760, %v2526_v46  ;;  %v2545_v58 = vsub.f32 %v76_v29, %v2519_v43  ;;  %v310_v59 = vand.u32 4294901760, %v309_v44 }
  0x31   :  { %1840 = vmatprep.subr.mxu0 %v2393_v0  ;;  %1897 = vmatprep.subr.mxu1 %v2393_v0  ;;  %v2549_v60 = vand.u32 4294901760, %v67_v51  ;;  %v323_v61 = vsub.f32 %v2504_v35, %v3355_v49  ;;  %v2555_v62 = vand.u32 4294901760, %v73_v53  ;;  %v3352_v63 = vand.u32 4294901760, %v2533_v50 }
  0x32   :  { %1841 = vmatpush3.msra.mxu0 %v2456_v12  ;;  %1898 = vmatpush3.msra.mxu1 %v289_v41  ;;  %v2559_v2 = vsub.f32 %v75_v39, %v2529_v48  ;;  %v317_v7 = vand.u32 4294901760, %v316_v52  ;;  %v2563_v8 = vand.u32 4294901760, %v72_v57  ;;  %v330_v9 = vsub.f32 %v2526_v46, %v3353_v56 }
  0x33   :  { %1842 = vmatprep.subr.mxu0 %v2393_v0  ;;  %1899 = vmatprep.subr.mxu1 %v2393_v0  ;;  %v3350_v13 = vand.u32 4294901760, %v2545_v58  ;;  %v2571_v19 = vsub.f32 %v74_v45, %v2541_v55  ;;  %v2574_v29 = vsub.f32 %v67_v51, %v2549_v60  ;;  %v2578_v32 = vand.u32 4294901760, %v71_v1 }
  0x34   :  { %1843 = vmatpush3.msra.mxu0 %v2465_v17  ;;  %1900 = vmatpush3.msra.mxu1 %v296_v47  ;;  %v2580_v33 = vand.u32 4294901760, %v68_v3  ;;  %v324_v34 = vand.u32 4294901760, %v323_v61  ;;  %v337_v39 = vsub.f32 %v2533_v50, %v3352_v63  ;;  %v3349_v40 = vand.u32 4294901760, %v2559_v2 }
  0x35   :  { %1844 = vmatprep.subr.mxu0 %v2393_v0  ;;  %1901 = vmatprep.subr.mxu1 %v2393_v0  ;;  %v2588_v41 = vsub.f32 %v73_v53, %v2555_v62  ;;  %v2592_v44 = vand.u32 4294901760, %v70_v14  ;;  %v2595_v45 = vsub.f32 %v72_v57, %v2563_v8  ;;  %v331_v47 = vand.u32 4294901760, %v330_v9 }
  0x36   :  { %1845 = vmatpush3.msra.mxu0 %v2481_v25  ;;  %1902 = vmatpush3.msra.mxu1 %v303_v54  ;;  %v344_v51 = vsub.f32 %v2545_v58, %v3350_v13  ;;  %v3351_v52 = vand.u32 4294901760, %v2571_v19  ;;  %v169_v53 = vand.u32 4294901760, %v2574_v29  ;;  %v2606_v54 = vsub.f32 %v68_v3, %v2580_v33 }
  0x37   :  { %1846 = vmatprep.subr.mxu0 %v2393_v0  ;;  %1903 = vmatprep.subr.mxu1 %v2393_v0  ;;  %v2608_v57 = vand.u32 4294901760, %v69_v42  ;;  %v351_v61 = vsub.f32 %v2559_v2, %v3349_v40  ;;  %v2616_v9 = vsub.f32 %v71_v1, %v2578_v32  ;;  %v3356_v3 = vand.u32 4294901760, %v2595_v45 }
  0x38   :  { %1847 = vmatpush3.msra.mxu0 %v2485_v27  ;;  %1904 = vmatpush3.msra.mxu1 %v310_v59  ;;  %v338_v59 = vand.u32 4294901760, %v337_v39  ;;  %v358_v39 = vsub.f32 %v2571_v19, %v3351_v52  ;;  %v170_v40 = vsub.f32 %v2574_v29, %v169_v53  ;;  %v2629_v1 = vsub.f32 %v70_v14, %v2592_v44 }
  0x39   :  { %1848 = vmatprep.subr.mxu0 %v2393_v0  ;;  %1905 = vmatprep.subr.mxu1 %v2393_v0  ;;  %v179_v13 = vand.u32 4294901760, %v2606_v54  ;;  %v352_v52 = vand.u32 4294901760, %v351_v61  ;;  %v3358_v63 = vand.u32 4294901760, %v2616_v9  ;;  %vm1267_vm2 = vcmask 1042434  }
  0x3a   :  { %1849 = vmatpush3.msra.mxu0 %v2519_v43  ;;  %1906 = vmatpush3.msra.mxu1 %v317_v7  ;;  %v3354_v7 = vand.u32 4294901760, %v2588_v41  ;;  %v171_v56 = vand.u32 4294901760, %v170_v40  ;;  %v3360_v61 = vand.u32 4294901760, %v2629_v1  ;;  %v2663_v40 = vand.u32 4294901760, %v2506_v36 }
  0x3b   :  { %1850 = vmatprep.subr.mxu0 %v2393_v0  ;;  %1907 = vmatprep.subr.mxu1 %v2393_v0  ;;  %vm1269_vm3 = vcmask 1043459   ;;  %vm1271_vm4 = vcmask 1044484   ;;  %vm1273_vm5 = vcmask 1045509   ;;  %vm1275_vm6 = vcmask 1046534  }
  0x3c   :  { %1851 = vmatpush3.msra.mxu0 %v2529_v48  ;;  %1908 = vmatpush3.msra.mxu1 %v324_v34  ;;  %v345_v34 = vand.u32 4294901760, %v344_v51  ;;  %v2638_v51 = vand.u32 4294901760, %v2491_v31  ;;  %v365_v14 = vsub.f32 %v2588_v41, %v3354_v7  ;;  %v180_v7 = vsub.f32 %v2606_v54, %v179_v13 }
  0x3d   :  { %1852 = vmatprep.subr.mxu0 %v2393_v0  ;;  %1909 = vmatprep.subr.mxu1 %v2393_v0  ;;  %v386_v38 = vsub.f32 %v2629_v1, %v3360_v61  ;;  %v2682_v28 = vsub.f32 %v2506_v36, %v2663_v40  ;;  %vm1277_vm7 = vcmask 1047559   ;;  %vm1283_vm8 = vcmask 64512  }
  0x3e   :  { %1853 = vmatpush3.msra.mxu0 %v2541_v55  ;;  %1910 = vmatpush3.msra.mxu1 %v331_v47  ;;  %v2635_v47 = vsub.f32 %v69_v42, %v2608_v57  ;;  %v359_v42 = vand.u32 4294901760, %v358_v39  ;;  %v366_v39 = vand.u32 4294901760, %v365_v14  ;;  %vm1287_vm9 = vcmask 59392  }
  0x3f   :  { %1854 = vmatprep.subr.mxu0 %v2393_v0  ;;  %1911 = vmatprep.subr.mxu1 %v2393_v0 }
  0x40   :  { %1855 = vmatpush3.msra.mxu0 %v2555_v62  ;;  %1912 = vmatpush3.msra.mxu1 %v338_v59  ;;  %v372_v59 = vsub.f32 %v2595_v45, %v3356_v3  ;;  %v3366_v49 = vand.u32 4294901760, %v2635_v47  ;;  %v379_v3 = vsub.f32 %v2616_v9, %v3358_v63 }
  0x41   :  { %1856 = vmatprep.subr.mxu0 %v2393_v0  ;;  %1913 = vmatprep.subr.mxu1 %v2393_v0 }
  0x42   :  { %1857 = vmatpush3.msra.mxu0 %v2563_v8  ;;  %1914 = vmatpush3.msra.mxu1 %v345_v34  ;;  %v2660_v34 = vsub.f32 %v2491_v31, %v2638_v51  ;;  %v373_v31 = vand.u32 4294901760, %v372_v59  ;;  %v190_v14 = vsub.f32 %v2635_v47, %v3366_v49  ;;  %v62_v59 = vld [vmem:[#allocation5 + $0x18] sm:$0xff] }
  0x43   :  { %1858 = vmatprep.subr.mxu0 %v2393_v0  ;;  %1915 = vmatprep.subr.mxu1 %v2393_v0 }
  0x44   :  { %1859 = vmatpush3.msra.mxu0 %v2578_v32  ;;  %1916 = vmatpush3.msra.mxu1 %v352_v52  ;;  %v181_v52 = vand.u32 4294901760, %v180_v7  ;;  %v3363_v63 = vand.u32 4294901760, %v2660_v34  ;;  %v387_v7 = vand.u32 4294901760, %v386_v38  ;;  %v191_v36 = vand.u32 4294901760, %v190_v14 }
  0x45   :  { %1860 = vmatprep.subr.mxu0 %v2393_v0  ;;  %1917 = vmatprep.subr.mxu1 %v2393_v0 }
  0x46   :  { %1861 = vmatpush3.msra.mxu0 %v2592_v44  ;;  %1918 = vmatpush3.msra.mxu1 %v359_v42  ;;  %v380_v42 = vand.u32 4294901760, %v379_v3  ;;  %v200_v3 = vsub.f32 %v2660_v34, %v3363_v63 }
  0x47   :  { %1863 = vmatmul.mubr.f32.vlgmr.msra.gmra.mxu0 %v171_v56  ;;  %1919 = vmatprep.subr.mxu1 %v2393_v0  ;;  %v2687_v56 = vand.u32 4294901760, %v2508_v37 }
  0x48   :  { %1920 = vmatpush3.msra.mxu1 %v366_v39  ;;  %1865 = vmatprep.mubr.msk.f32.mxu0 %vm2394_vm0, %v2393_v0  ;;  %v3361_v39 = vand.u32 4294901760, %v2682_v28 }
  0x49   :  { %1921 = vmatprep.subr.mxu1 %v2393_v0  ;;  %1960 = vmatprep.subr.mxu0 %v2393_v0  ;;  %v2701_v38 = vsub.f32 %v2508_v37, %v2687_v56 }
  0x4a   :  { %1922 = vmatpush3.msra.mxu1 %v373_v31  ;;  %1961 = vmatpush3.msra.mxu0 %v2460_v15  ;;  %v2705_v31 = vand.u32 4294901760, %v62_v59  ;;  %v210_v14 = vsub.f32 %v2682_v28, %v3361_v39  ;;  %v64_v39 = vld [vmem:[#allocation5 + $0x28] sm:$0xff]  ;;  %v3372_v15 = vand.u32 4294901760, %v2635_v47 }
  0x4b   :  { %1866 = vmatmul.mubr.f32.gmra.mxu0 %v181_v52  ;;  %1923 = vmatprep.subr.mxu1 %v2393_v0  ;;  %v201_v52 = vand.u32 4294901760, %v200_v3  ;;  %v3362_v37 = vand.u32 4294901760, %v2701_v38 }
  0x4c   :  { %1924 = vmatpush3.msra.mxu1 %v380_v42  ;;  %1868 = vmatprep.mubr.msk.f32.mxu0 %vm2394_vm0, %v2393_v0  ;;  %v63_v42 = vld [vmem:[#allocation5 + $0x20] sm:$0xff]  ;;  %v211_v3 = vand.u32 4294901760, %v210_v14 }
  0x4d   :  { %1925 = vmatprep.subr.mxu1 %v2393_v0  ;;  %1962 = vmatprep.subr.mxu0 %v2393_v0  ;;  %v220_v61 = vsub.f32 %v2701_v38, %v3362_v37  ;;  %v2745_v37 = vand.u32 4294901760, %v64_v39 }
  0x4e   :  { %1926 = vmatpush3.msra.mxu1 %v387_v7  ;;  %1963 = vmatpush3.msra.mxu0 %v2463_v16  ;;  %v2720_v7 = vsub.f32 %v62_v59, %v2705_v31  ;;  %v3374_v16 = vand.u32 4294901760, %v2475_v21 }
  0x4f   :  { %1869 = vmatmul.mubr.f32.gmra.mxu0 %v191_v36  ;;  %1928 = vmatmul.mubr.f32.vlgmr.msra.gmra.mxu1 %v2549_v60  ;;  %v2724_v36 = vand.u32 4294901760, %v63_v42  ;;  %v221_v14 = vand.u32 4294901760, %v220_v61  ;;  %v2761_v61 = vsub.f32 %v64_v39, %v2745_v37  ;;  %v66_v39 = vld [vmem:[#allocation5 + $0x38] sm:$0xff] }
  0x50   :  { %2025 = vmatprep.subr.mxu1 %v2393_v0  ;;  %1871 = vmatprep.mubr.msk.f32.mxu0 %vm2394_vm0, %v2393_v0  ;;  %v3364_v59 = vand.u32 4294901760, %v2720_v7  ;;  %v2785_v24 = vand.u32 4294901760, %v66_v39 }
  0x51   :  { %2026 = vmatpush3.msra.mxu1 %v2446_v4  ;;  %1930 = vmatprep.mubr.msk.f32.mxu1 %vm2394_vm0, %v2393_v0 }
  0x52   :  { %2027 = vmatprep.subr.mxu1 %v2393_v0  ;;  %1964 = vmatprep.subr.mxu0 %v2393_v0  ;;  %v230_v63 = vsub.f32 %v2720_v7, %v3364_v59 }
  0x53   :  { %1872 = vmatmul.mubr.f32.gmra.mxu0 %v201_v52  ;;  %1931 = vmatmul.mubr.f32.gmra.mxu1 %v2580_v33  ;;  %v2740_v52 = vsub.f32 %v63_v42, %v2724_v36 }
  0x54   :  { %2028 = vmatpush3.msra.mxu1 %v2448_v5  ;;  %1965 = vmatpush3.msra.mxu0 %v2468_v18  ;;  %v231_v59 = vand.u32 4294901760, %v230_v63  ;;  %v3369_v63 = vand.u32 4294901760, %v2761_v61 }
  0x55   :  { %2029 = vmatprep.subr.mxu1 %v2393_v0  ;;  %1874 = vmatprep.mubr.msk.f32.mxu0 %vm2394_vm0, %v2393_v0  ;;  %v3367_v42 = vand.u32 4294901760, %v2740_v52 }
  0x56   :  { %1933 = vmatprep.mubr.msk.f32.mxu1 %vm2394_vm0, %v2393_v0  ;;  %1966 = vmatprep.subr.mxu0 %v2393_v0 }
  0x57   :  { %2030 = vmatpush3.msra.mxu1 %v2450_v6  ;;  %1875 = vmatmul.mubr.f32.gmra.mxu0 %v211_v3  ;;  %v65_v3 = vld [vmem:[#allocation5 + $0x30] sm:$0xff]  ;;  %v240_v49 = vsub.f32 %v2740_v52, %v3367_v42 }
  0x58   :  { %1934 = vmatmul.mubr.f32.gmra.mxu1 %v2608_v57  ;;  %1967 = vmatpush3.msra.mxu0 %v2472_v20  ;;  %v2765_v26 = vand.u32 4294901760, %v65_v3 }
  0x59   :  { %1968 = vmatprep.subr.mxu0 %v2393_v0  ;;  %2031 = vmatprep.subr.mxu1 %v2393_v0  ;;  %v241_v42 = vand.u32 4294901760, %v240_v49 }
  0x5a   :  { %1969 = vmatpush3.msra.mxu0 %v2475_v21  ;;  %2032 = vmatpush3.msra.mxu1 %v2452_v10  ;;  %v3382_v21 = vand.u32 4294901760, %v2545_v58 }
  0x5b   :  { %1877 = vmatprep.mubr.msk.f32.mxu0 %vm2394_vm0, %v2393_v0  ;;  %1936 = vmatprep.mubr.msk.f32.mxu1 %vm2394_vm0, %v2393_v0 }
  0x5c   :  { %2033 = vmatprep.subr.mxu1 %v2393_v0  ;;  %1878 = vmatmul.mubr.f32.gmra.mxu0 %v221_v14  ;;  %v2781_v14 = vsub.f32 %v65_v3, %v2765_v26  ;;  %v2801_v3 = vsub.f32 %v66_v39, %v2785_v24 }
  0x5d   :  { %1937 = vmatmul.mubr.f32.gmra.mxu1 %v2638_v51  ;;  %1970 = vmatprep.subr.mxu0 %v2393_v0 }
  0x5e   :  { %2034 = vmatpush3.msra.mxu1 %v2454_v11  ;;  %1971 = vmatpush3.msra.mxu0 %v2489_v30  ;;  %v3370_v49 = vand.u32 4294901760, %v2781_v14  ;;  %v269_v39 = vand.u32 4294901760, %v2801_v3 }
  0x5f   :  { %2035 = vmatprep.subr.mxu1 %v2393_v0  ;;  %1880 = vmatprep.mubr.msk.f32.mxu0 %vm2394_vm0, %v2393_v0 }
  0x60   :  { %1939 = vmatprep.mubr.msk.f32.mxu1 %vm2394_vm0, %v2393_v0  ;;  %1972 = vmatprep.subr.mxu0 %v2393_v0 }
  0x61   :  { %2036 = vmatpush3.msra.mxu1 %v2456_v12  ;;  %1881 = vmatmul.mubr.f32.gmra.mxu0 %v231_v59  ;;  %v250_v59 = vsub.f32 %v2761_v61, %v3369_v63 }
  0x62   :  { %1940 = vmatmul.mubr.f32.gmra.mxu1 %v2663_v40  ;;  %1973 = vmatpush3.msra.mxu0 %v2504_v35 }
  0x63   :  { %2037 = vmatprep.subr.mxu1 %v2393_v0  ;;  %1974 = vmatprep.subr.mxu0 %v2393_v0  ;;  %v251_v63 = vand.u32 4294901760, %v250_v59 }
  0x64   :  { %2038 = vmatpush3.msra.mxu1 %v2465_v17  ;;  %1883 = vmatprep.mubr.msk.f32.mxu0 %vm2394_vm0, %v2393_v0 }
  0x65   :  { %1942 = vmatprep.mubr.msk.f32.mxu1 %vm2394_vm0, %v2393_v0  ;;  %1975 = vmatpush3.msra.mxu0 %v2526_v46 }
  0x66   :  { %1884 = vmatmul.mubr.f32.gmra.mxu0 %v241_v42  ;;  %1943 = vmatmul.mubr.f32.gmra.mxu1 %v2687_v56  ;;  %v260_v42 = vsub.f32 %v2781_v14, %v3370_v49  ;;  %v270_v49 = vsub.f32 %v2801_v3, %v269_v39 }
  0x67   :  { %1976 = vmatprep.subr.mxu0 %v2393_v0  ;;  %2039 = vmatprep.subr.mxu1 %v2393_v0 }
  0x68   :  { %1977 = vmatpush3.msra.mxu0 %v2533_v50  ;;  %2040 = vmatpush3.msra.mxu1 %v2481_v25  ;;  %v261_v59 = vand.u32 4294901760, %v260_v42 }
  0x69   :  { %1978 = vmatprep.subr.mxu0 %v2393_v0  ;;  %2041 = vmatprep.subr.mxu1 %v2393_v0 }
  0x6a   :  { %1886 = vmatprep.mubr.msk.f32.mxu0 %vm2394_vm0, %v2393_v0  ;;  %1945 = vmatprep.mubr.msk.f32.mxu1 %vm2394_vm0, %v2393_v0 }
  0x6b   :  { %1979 = vmatpush3.msra.mxu0 %v2545_v58  ;;  %2042 = vmatpush3.msra.mxu1 %v2485_v27 }
  0x6c   :  { %1887 = vmatmul.mubr.f32.gmra.mxu0 %v251_v63  ;;  %1946 = vmatmul.mubr.f32.gmra.mxu1 %v2705_v31  ;;  %v271_v63 = vand.u32 4294901760, %v270_v49 }
  0x6d   :  { %1980 = vmatprep.subr.mxu0 %v2393_v0  ;;  %2043 = vmatprep.subr.mxu1 %v2393_v0 }
  0x6e   :  { %1981 = vmatpush3.msra.mxu0 %v2559_v2  ;;  %2044 = vmatpush3.msra.mxu1 %v2519_v43 }
  0x6f   :  { %1982 = vmatprep.subr.mxu0 %v2393_v0  ;;  %1889 = vmatprep.mubr.msk.f32.mxu0 %vm2394_vm0, %v2393_v0 }
  0x70   :  { %1948 = vmatprep.mubr.msk.f32.mxu1 %vm2394_vm0, %v2393_v0  ;;  %1983 = vmatpush3.msra.mxu0 %v2571_v19 }
  0x71   :  { %1890 = vmatmul.mubr.f32.gmra.mxu0 %v261_v59  ;;  %1949 = vmatmul.mubr.f32.gmra.mxu1 %v2724_v36 }
  0x72   :  { %1984 = vmatprep.subr.mxu0 %v2393_v0  ;;  %2045 = vmatprep.subr.mxu1 %v2393_v0 }
  0x73   :  { %1985 = vmatpush3.msra.mxu0 %v2588_v41  ;;  %2046 = vmatpush3.msra.mxu1 %v2529_v48 }
  0x74   :  { %1986 = vmatprep.subr.mxu0 %v2393_v0  ;;  %1892 = vmatprep.mubr.msk.f32.mxu0 %vm2394_vm0, %v2393_v0 }
  0x75   :  { %1951 = vmatprep.mubr.msk.f32.mxu1 %vm2394_vm0, %v2393_v0  ;;  %1987 = vmatpush3.msra.mxu0 %v2595_v45 }
  0x76   :  { %2047 = vmatprep.subr.mxu1 %v2393_v0  ;;  %1893 = vmatmul.mubr.f32.gmra.mxu0 %v271_v63 }
  0x77   :  { %1952 = vmatmul.mubr.f32.gmra.mxu1 %v2745_v37  ;;  %1988 = vmatprep.subr.mxu0 %v2393_v0 }
  0x78   :  { %2048 = vmatpush3.msra.mxu1 %v2541_v55  ;;  %1989 = vmatpush3.msra.mxu0 %v2616_v9 }
  0x79   :  { %2049 = vmatprep.subr.mxu1 %v2393_v0  ;;  %1990 = vmatprep.subr.mxu0 %v2393_v0 }
  0x7a   :  { %2050 = vmatpush3.msra.mxu1 %v2555_v62  ;;  %1954 = vmatprep.mubr.msk.f32.mxu1 %vm2394_vm0, %v2393_v0 }
  0x7b   :  { %1991 = vmatpush3.msra.mxu0 %v2629_v1  ;;  %1992 = vmatprep.mubr.msk.f32.mxu0 %vm2394_vm0, %v2393_v0 }
  0x7c   :  { %1955 = vmatmul.mubr.f32.gmra.mxu1 %v2765_v26  ;;  %1993 = vmatmul.mubr.f32.vlgmr.msra.gmra.mxu0 %v2574_v29 }
  0x7d   :  { %2051 = vmatprep.subr.mxu1 %v2393_v0  ;;  %1957 = vmatprep.mubr.msk.f32.mxu1 %vm2394_vm0, %v2393_v0 }
  0x7e   :  { %2052 = vmatpush3.msra.mxu1 %v2563_v8  ;;  %1995 = vmatprep.mubr.msk.f32.mxu0 %vm2394_vm0, %v2393_v0 }
  0x7f   :  { %2053 = vmatprep.subr.mxu1 %v2393_v0  ;;  %2090 = vmatprep.subr.mxu0 %v2393_v0 }
  0x80   :  { %1958 = vmatmul.mubr.f32.gmra.mxu1 %v2785_v24  ;;  %1996 = vmatmul.mubr.f32.gmra.mxu0 %v2606_v54 }
  0x81   :  { %2054 = vmatpush3.msra.mxu1 %v2578_v32  ;;  %1998 = vmatprep.mubr.msk.f32.mxu0 %vm2394_vm0, %v2393_v0 }
  0x82   :  { %2055 = vmatprep.subr.mxu1 %v2393_v0  ;;  %2057 = vmatprep.mubr.msk.f32.mxu1 %vm2394_vm0, %v2393_v0 }
  0x83   :  { %2056 = vmatpush3.msra.mxu1 %v2592_v44  ;;  %2091 = vmatpush3.msra.mxu0 %v280_v22  ;;  %v3383_v22 = vand.u32 4294901760, %v2720_v7 }
  0x84   :  { %1999 = vmatmul.mubr.f32.gmra.mxu0 %v2635_v47  ;;  %2058 = vmatmul.mubr.f32.vlgmr.msra.gmra.mxu1 %v169_v53 }
  0x85   :  { %2155 = vmatprep.subr.mxu1 %v2393_v0  ;;  %2092 = vmatprep.subr.mxu0 %v2393_v0 }
  0x86   :  { %2156 = vmatpush3.msra.mxu1 %v2446_v4  ;;  %2093 = vmatpush3.msra.mxu0 %v287_v23  ;;  %v3371_v4 = vand.u32 4294901760, %v2468_v18  ;;  %v3376_v18 = vand.u32 4294901760, %v2489_v30  ;;  %v3384_v23 = vand.u32 4294901760, %v2559_v2  ;;  %v3388_v30 = vand.u32 4294901760, %v2595_v45 }
  0x87   :  { %2001 = vmatprep.mubr.msk.f32.mxu0 %vm2394_vm0, %v2393_v0  ;;  %2060 = vmatprep.mubr.msk.f32.mxu1 %vm2394_vm0, %v2393_v0 }
  0x88   :  { %2157 = vmatprep.subr.mxu1 %v2393_v0  ;;  %2002 = vmatmul.mubr.f32.gmra.mxu0 %v2660_v34 }
  0x89   :  { %2061 = vmatmul.mubr.f32.gmra.mxu1 %v179_v13  ;;  %2094 = vmatprep.subr.mxu0 %v2393_v0 }
  0x8a   :  { %2158 = vmatpush3.msra.mxu1 %v2448_v5  ;;  %2095 = vmatpush3.msra.mxu0 %v3371_v4  ;;  %v3373_v5 = vand.u32 4294901760, %v2472_v20  ;;  %v3380_v20 = vand.u32 4294901760, %v2701_v38 }
  0x8b   :  { %2159 = vmatprep.subr.mxu1 %v2393_v0  ;;  %2004 = vmatprep.mubr.msk.f32.mxu0 %vm2394_vm0, %v2393_v0 }
  0x8c   :  { %2063 = vmatprep.mubr.msk.f32.mxu1 %vm2394_vm0, %v2393_v0  ;;  %2096 = vmatprep.subr.mxu0 %v2393_v0 }
  0x8d   :  { %2160 = vmatpush3.msra.mxu1 %v2450_v6  ;;  %2005 = vmatmul.mubr.f32.gmra.mxu0 %v2682_v28  ;;  %v3375_v6 = vand.u32 4294901760, %v2660_v34 }
  0x8e   :  { %2064 = vmatmul.mubr.f32.gmra.mxu1 %v3372_v15  ;;  %2097 = vmatpush3.msra.mxu0 %v3373_v5 }
  0x8f   :  { %2098 = vmatprep.subr.mxu0 %v2393_v0  ;;  %2161 = vmatprep.subr.mxu1 %v2393_v0 }
  0x90   :  { %2099 = vmatpush3.msra.mxu0 %v3374_v16  ;;  %2162 = vmatpush3.msra.mxu1 %v2452_v10  ;;  %v3377_v10 = vand.u32 4294901760, %v2682_v28  ;;  %v3387_v28 = vand.u32 4294901760, %v2588_v41 }
  0x91   :  { %2007 = vmatprep.mubr.msk.f32.mxu0 %vm2394_vm0, %v2393_v0  ;;  %2066 = vmatprep.mubr.msk.f32.mxu1 %vm2394_vm0, %v2393_v0 }
  0x92   :  { %2163 = vmatprep.subr.mxu1 %v2393_v0  ;;  %2008 = vmatmul.mubr.f32.gmra.mxu0 %v2701_v38 }
  0x93   :  { %2067 = vmatmul.mubr.f32.gmra.mxu1 %v3375_v6  ;;  %2100 = vmatprep.subr.mxu0 %v2393_v0 }
  0x94   :  { %2164 = vmatpush3.msra.mxu1 %v2454_v11  ;;  %2101 = vmatpush3.msra.mxu0 %v3376_v18  ;;  %v3378_v11 = vand.u32 4294901760, %v2504_v35  ;;  %v3389_v35 = vand.u32 4294901760, %v2761_v61 }
  0x95   :  { %2165 = vmatprep.subr.mxu1 %v2393_v0  ;;  %2010 = vmatprep.mubr.msk.f32.mxu0 %vm2394_vm0, %v2393_v0 }
  0x96   :  { %2069 = vmatprep.mubr.msk.f32.mxu1 %vm2394_vm0, %v2393_v0  ;;  %2102 = vmatprep.subr.mxu0 %v2393_v0 }
  0x97   :  { %2166 = vmatpush3.msra.mxu1 %v2456_v12  ;;  %2011 = vmatmul.mubr.f32.gmra.mxu0 %v2720_v7  ;;  %v3379_v12 = vand.u32 4294901760, %v2526_v46  ;;  %v3391_v46 = vand.u32 4294901760, %v2629_v1 }
  0x98   :  { %2070 = vmatmul.mubr.f32.gmra.mxu1 %v3377_v10  ;;  %2103 = vmatpush3.msra.mxu0 %v3378_v11 }
  0x99   :  { %2167 = vmatprep.subr.mxu1 %v2393_v0  ;;  %2104 = vmatprep.subr.mxu0 %v2393_v0 }
  0x9a   :  { %2168 = vmatpush3.msra.mxu1 %v2465_v17  ;;  %2013 = vmatprep.mubr.msk.f32.mxu0 %vm2394_vm0, %v2393_v0  ;;  %v3381_v17 = vand.u32 4294901760, %v2533_v50 }
  0x9b   :  { %2072 = vmatprep.mubr.msk.f32.mxu1 %vm2394_vm0, %v2393_v0  ;;  %2105 = vmatpush3.msra.mxu0 %v3379_v12 }
  0x9c   :  { %2014 = vmatmul.mubr.f32.gmra.mxu0 %v2740_v52  ;;  %2073 = vmatmul.mubr.f32.gmra.mxu1 %v3380_v20 }
  0x9d   :  { %2106 = vmatprep.subr.mxu0 %v2393_v0  ;;  %2169 = vmatprep.subr.mxu1 %v2393_v0 }
  0x9e   :  { %2107 = vmatpush3.msra.mxu0 %v3381_v17  ;;  %2170 = vmatpush3.msra.mxu1 %v2481_v25  ;;  %v3385_v25 = vand.u32 4294901760, %v2571_v19 }
  0x9f   :  { %2108 = vmatprep.subr.mxu0 %v2393_v0  ;;  %2171 = vmatprep.subr.mxu1 %v2393_v0 }
  0xa0   :  { %2016 = vmatprep.mubr.msk.f32.mxu0 %vm2394_vm0, %v2393_v0  ;;  %2075 = vmatprep.mubr.msk.f32.mxu1 %vm2394_vm0, %v2393_v0 }
  0xa1   :  { %2109 = vmatpush3.msra.mxu0 %v3382_v21  ;;  %2172 = vmatpush3.msra.mxu1 %v2485_v27  ;;  %v3386_v27 = vand.u32 4294901760, %v2740_v52 }
  0xa2   :  { %2017 = vmatmul.mubr.f32.gmra.mxu0 %v2761_v61  ;;  %2076 = vmatmul.mubr.f32.gmra.mxu1 %v3383_v22 }
  0xa3   :  { %2110 = vmatprep.subr.mxu0 %v2393_v0  ;;  %2173 = vmatprep.subr.mxu1 %v2393_v0 }
  0xa4   :  { %2111 = vmatpush3.msra.mxu0 %v3384_v23  ;;  %2174 = vmatpush3.msra.mxu1 %v2519_v43  ;;  %v3390_v43 = vand.u32 4294901760, %v2616_v9 }
  0xa5   :  { %2112 = vmatprep.subr.mxu0 %v2393_v0  ;;  %2019 = vmatprep.mubr.msk.f32.mxu0 %vm2394_vm0, %v2393_v0 }
  0xa6   :  { %2078 = vmatprep.mubr.msk.f32.mxu1 %vm2394_vm0, %v2393_v0  ;;  %2113 = vmatpush3.msra.mxu0 %v3385_v25 }
  0xa7   :  { %2020 = vmatmul.mubr.f32.gmra.mxu0 %v2781_v14  ;;  %2079 = vmatmul.mubr.f32.gmra.mxu1 %v3386_v27 }
  0xa8   :  { %2114 = vmatprep.subr.mxu0 %v2393_v0  ;;  %2175 = vmatprep.subr.mxu1 %v2393_v0 }
  0xa9   :  { %2115 = vmatpush3.msra.mxu0 %v3387_v28  ;;  %2176 = vmatpush3.msra.mxu1 %v2529_v48  ;;  %v3392_v48 = vand.u32 4294901760, %v2781_v14 }
  0xaa   :  { %2116 = vmatprep.subr.mxu0 %v2393_v0  ;;  %2022 = vmatprep.mubr.msk.f32.mxu0 %vm2394_vm0, %v2393_v0 }
  0xab   :  { %2081 = vmatprep.mubr.msk.f32.mxu1 %vm2394_vm0, %v2393_v0  ;;  %2117 = vmatpush3.msra.mxu0 %v3388_v30 }
  0xac   :  { %2177 = vmatprep.subr.mxu1 %v2393_v0  ;;  %2023 = vmatmul.mubr.f32.gmra.mxu0 %v2801_v3 }
  0xad   :  { %2082 = vmatmul.mubr.f32.gmra.mxu1 %v3389_v35  ;;  %2118 = vmatprep.subr.mxu0 %v2393_v0 }
  0xae   :  { %2178 = vmatpush3.msra.mxu1 %v2541_v55  ;;  %2119 = vmatpush3.msra.mxu0 %v3390_v43 }
  0xaf   :  { %2179 = vmatprep.subr.mxu1 %v2393_v0  ;;  %2120 = vmatprep.subr.mxu0 %v2393_v0 }
  0xb0   :  { %2180 = vmatpush3.msra.mxu1 %v2555_v62  ;;  %2084 = vmatprep.mubr.msk.f32.mxu1 %vm2394_vm0, %v2393_v0 }
  0xb1   :  { %2121 = vmatpush3.msra.mxu0 %v3391_v46  ;;  %2122 = vmatprep.mubr.msk.f32.mxu0 %vm2394_vm0, %v2393_v0 }
  0xb2   :  { %2085 = vmatmul.mubr.f32.gmra.mxu1 %v3392_v48  ;;  %2123 = vmatmul.mubr.f32.vlgmr.msra.gmra.mxu0 %v2549_v60 }
  0xb3   :  { %2181 = vmatprep.subr.mxu1 %v2393_v0  ;;  %2087 = vmatprep.mubr.msk.f32.mxu1 %vm2394_vm0, %v2393_v0 }
  0xb4   :  { %2182 = vmatpush3.msra.mxu1 %v2563_v8  ;;  %2125 = vmatprep.mubr.msk.f32.mxu0 %vm2394_vm0, %v2393_v0 }
  0xb5   :  { %2183 = vmatprep.subr.mxu1 %v2393_v0 }
  0xb6   :  { %2088 = vmatmul.mubr.f32.gmra.mxu1 %v269_v39  ;;  %2126 = vmatmul.mubr.f32.gmra.mxu0 %v2580_v33 }
  0xb7   :  { %2184 = vmatpush3.msra.mxu1 %v2578_v32  ;;  %2128 = vmatprep.mubr.msk.f32.mxu0 %vm2394_vm0, %v2393_v0 }
  0xb8   :  { %2185 = vmatprep.subr.mxu1 %v2393_v0  ;;  %2187 = vmatprep.mubr.msk.f32.mxu1 %vm2394_vm0, %v2393_v0 }
  0xb9   :  { %2186 = vmatpush3.msra.mxu1 %v2592_v44 }
  0xba   :  { %2129 = vmatmul.mubr.f32.gmra.mxu0 %v2608_v57  ;;  %2188 = vmatmul.mubr.f32.vlgmr.msra.gmra.mxu1 %v2549_v60 }
  0xbb   :  { %2131 = vmatprep.mubr.msk.f32.mxu0 %vm2394_vm0, %v2393_v0  ;;  %2190 = vmatprep.mubr.msk.f32.mxu1 %vm2394_vm0, %v2393_v0 }
  0xbe   :  { %2132 = vmatmul.mubr.f32.gmra.mxu0 %v2638_v51  ;;  %2191 = vmatmul.mubr.f32.gmra.mxu1 %v2580_v33 }
  0xbf   :  { %2134 = vmatprep.mubr.msk.f32.mxu0 %vm2394_vm0, %v2393_v0  ;;  %2193 = vmatprep.mubr.msk.f32.mxu1 %vm2394_vm0, %v2393_v0 }
  0xc2   :  { %2135 = vmatmul.mubr.f32.gmra.mxu0 %v2663_v40  ;;  %2194 = vmatmul.mubr.f32.gmra.mxu1 %v2608_v57 }
  0xc3   :  { %2137 = vmatprep.mubr.msk.f32.mxu0 %vm2394_vm0, %v2393_v0  ;;  %2196 = vmatprep.mubr.msk.f32.mxu1 %vm2394_vm0, %v2393_v0 }
  0xc6   :  { %2138 = vmatmul.mubr.f32.gmra.mxu0 %v2687_v56  ;;  %2197 = vmatmul.mubr.f32.gmra.mxu1 %v2638_v51 }
  0xc7   :  { %2140 = vmatprep.mubr.msk.f32.mxu0 %vm2394_vm0, %v2393_v0  ;;  %2199 = vmatprep.mubr.msk.f32.mxu1 %vm2394_vm0, %v2393_v0 }
  0xca   :  { %2141 = vmatmul.mubr.f32.gmra.mxu0 %v2705_v31  ;;  %2200 = vmatmul.mubr.f32.gmra.mxu1 %v2663_v40 }
  0xcb   :  { %2143 = vmatprep.mubr.msk.f32.mxu0 %vm2394_vm0, %v2393_v0  ;;  %2202 = vmatprep.mubr.msk.f32.mxu1 %vm2394_vm0, %v2393_v0 }
  0xce   :  { %2144 = vmatmul.mubr.f32.gmra.mxu0 %v2724_v36  ;;  %2203 = vmatmul.mubr.f32.gmra.mxu1 %v2687_v56 }
  0xcf   :  { %2146 = vmatprep.mubr.msk.f32.mxu0 %vm2394_vm0, %v2393_v0  ;;  %2205 = vmatprep.mubr.msk.f32.mxu1 %vm2394_vm0, %v2393_v0 }
  0xd2   :  { %2147 = vmatmul.mubr.f32.gmra.mxu0 %v2745_v37  ;;  %2206 = vmatmul.mubr.f32.gmra.mxu1 %v2705_v31 }
  0xd3   :  { %2149 = vmatprep.mubr.msk.f32.mxu0 %vm2394_vm0, %v2393_v0  ;;  %2208 = vmatprep.mubr.msk.f32.mxu1 %vm2394_vm0, %v2393_v0 }
  0xd6   :  { %2150 = vmatmul.mubr.f32.gmra.mxu0 %v2765_v26  ;;  %2209 = vmatmul.mubr.f32.gmra.mxu1 %v2724_v36 }
  0xd7   :  { %2152 = vmatprep.mubr.msk.f32.mxu0 %vm2394_vm0, %v2393_v0  ;;  %2211 = vmatprep.mubr.msk.f32.mxu1 %vm2394_vm0, %v2393_v0 }
  0xda   :  { %2153 = vmatmul.mubr.f32.gmra.mxu0 %v2785_v24  ;;  %2212 = vmatmul.mubr.f32.gmra.mxu1 %v2745_v37 }
  0xdb   :  { %2214 = vmatprep.mubr.msk.f32.mxu1 %vm2394_vm0, %v2393_v0 }
  0xde   :  { %2215 = vmatmul.mubr.f32.gmra.mxu1 %v2765_v26 }
  0xdf   :  { %2217 = vmatprep.mubr.msk.f32.mxu1 %vm2394_vm0, %v2393_v0 }
  0xe2   :  { %2218 = vmatmul.mubr.f32.gmra.mxu1 %v2785_v24 }
 0x107   :  { %v173_v50 = vpop.f32.mrf.mxu0 }
 0x109   :  { %v1864_v55 = vpop.f32.mrf.mxu0 }
 0x10b   :  { %v183_v58 = vpop.f32.mrf.mxu0 }
 0x10d   :  { %v1867_v60 = vpop.f32.mrf.mxu0 }
 0x10f   :  { %v193_v62 = vpop.f32.mrf.mxu0  ;;  %v424_v2 = vpop.f32.mrf.mxu1 }
 0x110   :  { %v3088_v8 = vadd.f32 %v424_v2, %v173_v50 }
 0x111   :  { %v1870_v13 = vpop.f32.mrf.mxu0  ;;  %v1929_v19 = vpop.f32.mrf.mxu1 }
 0x113   :  { %v203_v29 = vpop.f32.mrf.mxu0  ;;  %v430_v32 = vpop.f32.mrf.mxu1 }
 0x114   :  { %v3090_v33 = vadd.f32 %v430_v32, %v183_v58 }
 0x115   :  { %v1873_v26 = vpop.f32.mrf.mxu0  ;;  %v1932_v41 = vpop.f32.mrf.mxu1 }
 0x117   :  { %v213_v44 = vpop.f32.mrf.mxu0 }
 0x118   :  { %v436_v0 = vpop.f32.mrf.mxu1 }
 0x119   :  { %v3092_v45 = vadd.f32 %v436_v0, %v193_v62  ;;  %v1876_v24 = vpop.f32.mrf.mxu0 }
 0x11a   :  { %v1935_v53 = vpop.f32.mrf.mxu1 }
 0x11c   :  { %v223_v54 = vpop.f32.mrf.mxu0 }
 0x11d   :  { %v442_v57 = vpop.f32.mrf.mxu1 }
 0x11e   :  { %v3094_v9 = vadd.f32 %v442_v57, %v203_v29  ;;  %v1879_v1 = vpop.f32.mrf.mxu0 }
 0x11f   :  { %v1938_v47 = vpop.f32.mrf.mxu1 }
 0x121   :  { %v233_v51 = vpop.f32.mrf.mxu0 }
 0x122   :  { %v448_v34 = vpop.f32.mrf.mxu1 }
 0x123   :  { %v3096_v40 = vadd.f32 %v448_v34, %v213_v44  ;;  %v1882_v56 = vpop.f32.mrf.mxu0 }
 0x124   :  { %v1941_v38 = vpop.f32.mrf.mxu1 }
 0x126   :  { %v243_v31 = vpop.f32.mrf.mxu0  ;;  %v454_v37 = vpop.f32.mrf.mxu1 }
 0x127   :  { %v3098_v7 = vadd.f32 %v454_v37, %v223_v54 }
 0x128   :  { %v1885_v36 = vpop.f32.mrf.mxu0  ;;  %v1944_v52 = vpop.f32.mrf.mxu1 }
 0x12c   :  { %v253_v61 = vpop.f32.mrf.mxu0  ;;  %v460_v14 = vpop.f32.mrf.mxu1 }
 0x12d   :  { %v3100_v49 = vadd.f32 %v460_v14, %v233_v51 }
 0x12e   :  { %v1888_v3 = vpop.f32.mrf.mxu0  ;;  %v1947_v42 = vpop.f32.mrf.mxu1 }
 0x131   :  { %v263_v39 = vpop.f32.mrf.mxu0  ;;  %v466_v59 = vpop.f32.mrf.mxu1 }
 0x132   :  { %v3102_v63 = vadd.f32 %v466_v59, %v243_v31 }
 0x133   :  { %v1891_v4 = vpop.f32.mrf.mxu0  ;;  %v1950_v15 = vpop.f32.mrf.mxu1 }
 0x136   :  { %v273_v5 = vpop.f32.mrf.mxu0 }
 0x137   :  { %v472_v16 = vpop.f32.mrf.mxu1 }
 0x138   :  { %v3104_v6 = vadd.f32 %v472_v16, %v253_v61  ;;  %v1894_v18 = vpop.f32.mrf.mxu0 }
 0x139   :  { %v1953_v10 = vpop.f32.mrf.mxu1 }
 0x13c   :  { %v478_v11 = vpop.f32.mrf.mxu1  ;;  %v588_v12 = vpop.f32.mrf.mxu0 }
 0x13d   :  { %v3106_v20 = vadd.f32 %v478_v11, %v263_v39  ;;  %v589_v15 = vadd.f32 %v588_v12, %v3088_v8 }
 0x13e   :  { %v1956_v17 = vpop.f32.mrf.mxu1  ;;  %v1994_v21 = vpop.f32.mrf.mxu0 }
 0x140   :  { %v484_v22 = vpop.f32.mrf.mxu1  ;;  %v595_v23 = vpop.f32.mrf.mxu0 }
 0x141   :  { %v3108_v25 = vadd.f32 %v484_v22, %v273_v5  ;;  %v596_v17 = vadd.f32 %v595_v23, %v3090_v33 }
 0x142   :  { %v1959_v27 = vpop.f32.mrf.mxu1  ;;  %v1997_v28 = vpop.f32.mrf.mxu0 }
 0x144   :  { %v602_v30 = vpop.f32.mrf.mxu0  ;;  %v747_v35 = vpop.f32.mrf.mxu1 }
 0x145   :  { %v748_v18 = vadd.f32 %v747_v35, %v589_v15 }
 0x146   :  { %v2000_v43 = vpop.f32.mrf.mxu0  ;;  %v2059_v46 = vpop.f32.mrf.mxu1 }
 0x148   :  { %v609_v48 = vpop.f32.mrf.mxu0 }
 0x149   :  { %v755_v50 = vpop.f32.mrf.mxu1 }
 0x14a   :  { %v2003_v55 = vpop.f32.mrf.mxu0  ;;  %v756_v28 = vadd.f32 %v755_v50, %v596_v17 }
 0x14b   :  { %v2062_v58 = vpop.f32.mrf.mxu1 }
 0x14c   :  { %v603_v58 = vadd.f32 %v602_v30, %v3092_v45 }
 0x14d   :  { %v3110_v60 = vpop.f32.mrf.mxu0 }
 0x14e   :  { %v763_v62 = vpop.f32.mrf.mxu1  ;;  %v617_v45 = vadd.f32 %v3110_v60, %v3096_v40 }
 0x14f   :  { %v2006_v2 = vpop.f32.mrf.mxu0 }
 0x150   :  { %v2065_v13 = vpop.f32.mrf.mxu1 }
 0x151   :  { %v764_v13 = vadd.f32 %v763_v62, %v603_v58 }
 0x152   :  { %v3112_v19 = vpop.f32.mrf.mxu0 }
 0x153   :  { %v771_v29 = vpop.f32.mrf.mxu1 }
 0x154   :  { %v2009_v32 = vpop.f32.mrf.mxu0 }
 0x155   :  { %v2068_v26 = vpop.f32.mrf.mxu1 }
 0x157   :  { %v3114_v41 = vpop.f32.mrf.mxu0 }
 0x158   :  { %v779_v44 = vpop.f32.mrf.mxu1 }
 0x159   :  { %v2012_v0 = vpop.f32.mrf.mxu0 }
 0x15a   :  { %v2071_v24 = vpop.f32.mrf.mxu1  ;;  %v610_v0 = vadd.f32 %v609_v48, %v3094_v9  ;;  %v3145_v9 = vld [vmem:[%s3347_s3] ss:$0 sm:$0xff]  ;;  %v624_v48 = vadd.f32 %v3112_v19, %v3098_v7  ;;  %s2396_s3 = smov [#allocation8]  }
 0x15b   :  { %s1654_s5 = sshll.u32 %s2396_s3, 4  ;;  %s1655_s5 = int_to_ptr.vmem [resolvable:$true] %s1654_s5 }
 0x15c   :  { %v3116_v53 = vpop.f32.mrf.mxu0  ;;  %v3118_v54 = vpop.f32.mrf.mxu1  ;;  %v772_v50 = vadd.f32 %v771_v29, %v610_v0  ;;  %s2362_s6 = scalar_lea.vmem %s1655_s5, 1024  ;;  %p2367_p2 = scmp.lt.s32.totalorder %s1655_s5, %s1655_s5 }
 0x15d   :  { %p2363_p1 = scmp.ne.s32.totalorder %s1655_s5, %s2362_s6  ;;  %p2368_p3 = scmp.lt.s32.totalorder %s2362_s6, %s2362_s6 }
 0x15e   :  { %v2015_v57 = vpop.f32.mrf.mxu0  ;;  %v2074_v1 = vpop.f32.mrf.mxu1 }
 0x15f   :  { %p2369_p4 = por %p2368_p3, %p2367_p2 }
 0x161   :  { %p2370_p5 = pnand %p2369_p4, %p2363_p1 }
 0x162   :  { %v3120_v47 = vpop.f32.mrf.mxu0  ;;  %v3122_v51 = vpop.f32.mrf.mxu1 }
 0x164   :  { %v2018_v34 = vpop.f32.mrf.mxu0  ;;  %v2077_v56 = vpop.f32.mrf.mxu1 }
 0x167   :  { %v3124_v38 = vpop.f32.mrf.mxu0  ;;  %v3126_v31 = vpop.f32.mrf.mxu1 }
 0x169   :  { %v2021_v37 = vpop.f32.mrf.mxu0  ;;  %v2080_v36 = vpop.f32.mrf.mxu1 }
 0x16a   :  { %v780_v37 = vadd.f32 %v779_v44, %v617_v45 }
 0x16c   :  { %v3128_v52 = vpop.f32.mrf.mxu0 }
 0x16d   :  { %v3130_v61 = vpop.f32.mrf.mxu1 }
 0x16e   :  { %v2024_v14 = vpop.f32.mrf.mxu0 }
 0x16f   :  { %v2083_v3 = vpop.f32.mrf.mxu1 }
 0x172   :  { %v3132_v42 = vpop.f32.mrf.mxu1  ;;  %v946_v39 = vpop.f32.mrf.mxu0 }
 0x173   :  { %v947_v21 = vadd.f32 %v946_v39, %v748_v18  ;;  %v631_v18 = vadd.f32 %v3114_v41, %v3100_v49 }
 0x174   :  { %v2086_v59 = vpop.f32.mrf.mxu1  ;;  %v2124_v4 = vpop.f32.mrf.mxu0 }
 0x175   :  { %v788_v59 = vadd.f32 %v3118_v54, %v624_v48  ;;  %v796_v17 = vadd.f32 %v3122_v51, %v631_v18  ;;  %v1219_v18 = vlaneseq }
 0x176   :  { %v3135_v5 = vpop.f32.mrf.mxu1  ;;  %v952_v16 = vpop.f32.mrf.mxu0 }
 0x177   :  { %v953_v2 = vadd.f32 %v952_v16, %v756_v28  ;;  %v638_v28 = vadd.f32 %v3116_v53, %v3102_v63 }
 0x178   :  { %v2089_v10 = vpop.f32.mrf.mxu1  ;;  %v2127_v11 = vpop.f32.mrf.mxu0 }
 0x17a   :  { %v958_v22 = vpop.f32.mrf.mxu0  ;;  %v1093_v27 = vpop.f32.mrf.mxu1 }
 0x17b   :  { %v1094_v43 = vadd.f32 %v1093_v27, %v947_v21  ;;  %v959_v33 = vadd.f32 %v958_v22, %v764_v13 }
 0x17c   :  { %v2130_v46 = vpop.f32.mrf.mxu0  ;;  %v2189_v55 = vpop.f32.mrf.mxu1 }
 0x17d   :  { %2231 = vtanh.f32 %v1094_v43  ;;  %v804_v55 = vadd.f32 %v3126_v31, %v638_v28 }
 0x17e   :  { %v964_v8 = vpop.f32.mrf.mxu0  ;;  %v1099_v12 = vpop.f32.mrf.mxu1 }
 0x17f   :  { %v1100_v32 = vadd.f32 %v1099_v12, %v953_v2  ;;  %v965_v30 = vadd.f32 %v964_v8, %v772_v50  ;;  %v645_v12 = vadd.f32 %v3120_v47, %v3104_v6 }
 0x180   :  { %v2133_v35 = vpop.f32.mrf.mxu0  ;;  %v2192_v26 = vpop.f32.mrf.mxu1 }
 0x181   :  { %2233 = vtanh.f32 %v1100_v32  ;;  %v812_v35 = vadd.f32 %v3130_v61, %v645_v12 }
 0x182   :  { %v970_v23 = vpop.f32.mrf.mxu0  ;;  %v1105_v24 = vpop.f32.mrf.mxu1 }
 0x183   :  { %v1106_v57 = vadd.f32 %v1105_v24, %v959_v33  ;;  %v971_v29 = vadd.f32 %v970_v23, %v780_v37  ;;  %v652_v23 = vadd.f32 %v3124_v38, %v3106_v20 }
 0x184   :  { %v2136_v1 = vpop.f32.mrf.mxu0  ;;  %v2195_v34 = vpop.f32.mrf.mxu1 }
 0x185   :  { %2235 = vtanh.f32 %v1106_v57  ;;  %v820_v57 = vadd.f32 %v3132_v42, %v652_v23 }
 0x186   :  { %v976_v56 = vpop.f32.mrf.mxu0  ;;  %v1111_v62 = vpop.f32.mrf.mxu1 }
 0x187   :  { %v1112_v36 = vadd.f32 %v1111_v62, %v965_v30  ;;  %v977_v10 = vadd.f32 %v976_v56, %v788_v59  ;;  %v659_v30 = vadd.f32 %v3128_v52, %v3108_v25 }
 0x188   :  { %v2139_v14 = vpop.f32.mrf.mxu0  ;;  %v2198_v3 = vpop.f32.mrf.mxu1 }
 0x189   :  { %2237 = vtanh.f32 %v1112_v36  ;;  %v828_v62 = vadd.f32 %v3135_v5, %v659_v30 }
 0x18a   :  { %v2232_v39 = vpop.eup %2231  ;;  %v982_v40 = vpop.f32.mrf.mxu0 }
 0x18b   :  { %v1117_v60 = vpop.f32.mrf.mxu1  ;;  %v1175_v44 = vmul.f32 %v2232_v39, %v3145_v9  ;;  %v983_v43 = vadd.f32 %v982_v40, %v796_v17 }
 0x18c   :  { %v1118_v4 = vadd.f32 %v1117_v60, %v971_v29  ;;  %v2142_v15 = vpop.f32.mrf.mxu0 }
 0x18d   :  { %v2201_v16 = vpop.f32.mrf.mxu1  ;;  %1186 = vadd.xlane.f32.xlu0 %v1175_v44 }
 0x18e   :  { %2239 = vtanh.f32 %v1118_v4  ;;  %v2234_v11 = vpop.eup %2233  ;;  %v988_v7 = vpop.f32.mrf.mxu0 }
 0x18f   :  { %v1123_v19 = vpop.f32.mrf.mxu1  ;;  %v1176_v22 = vmul.f32 %v2234_v11, %v3145_v9  ;;  %v989_v13 = vadd.f32 %v988_v7, %v804_v55  ;;  %v1220_v11 = vand.u32 127, %v1219_v18  ;;  %v3176_v7 = vshrl.u32 %v1219_v18, 7 }
 0x190   :  { %v1124_v21 = vadd.f32 %v1123_v19, %v977_v10  ;;  %v2145_v54 = vpop.f32.mrf.mxu0 }
 0x191   :  { %v2204_v27 = vpop.f32.mrf.mxu1  ;;  %1188 = vadd.xlane.f32.xlu0 %v1176_v22  ;;  %v1323_v18 = vsub.s32 7, %v3176_v7 }
 0x192   :  { %2241 = vtanh.f32 %v1124_v21  ;;  %v2236_v49 = vpop.eup %2235  ;;  %v994_v41 = vpop.f32.mrf.mxu0  ;;  %v3181_v21 = vsub.s32 %v1220_v11, %v3176_v7 }
 0x193   :  { %v1129_v46 = vpop.f32.mrf.mxu1  ;;  %v1177_v2 = vmul.f32 %v2236_v49, %v3145_v9  ;;  %v995_v24 = vadd.f32 %v994_v41, %v812_v35 }
 0x194   :  { %v1130_v58 = vadd.f32 %v1129_v46, %v983_v43  ;;  %v2148_v51 = vpop.f32.mrf.mxu0 }
 0x195   :  { %v2207_v8 = vpop.f32.mrf.mxu1  ;;  %1190 = vadd.xlane.f32.xlu1 %v1177_v2 }
 0x196   :  { %2243 = vtanh.f32 %v1130_v58  ;;  %v2238_v63 = vpop.eup %2237  ;;  %v1000_v53 = vpop.f32.mrf.mxu0 }
 0x197   :  { %v1135_v32 = vpop.f32.mrf.mxu1  ;;  %v1178_v0 = vmul.f32 %v2238_v63, %v3145_v9  ;;  %v1001_v56 = vadd.f32 %v1000_v53, %v820_v57  ;;  %v2395_v57 = vmov 0  }
 0x198   :  { %v1136_v26 = vadd.f32 %v1135_v32, %v989_v13  ;;  %v2151_v31 = vpop.f32.mrf.mxu0  ;;  %2230 = vset.pattern.permute.xlu0 %v2395_v57  ;;  %2229 = vset.pattern.permute.xlu1 %v2395_v57 }
 0x199   :  { %v2210_v33 = vpop.f32.mrf.mxu1  ;;  %1192 = vadd.xlane.f32.xlu1 %v1178_v0 }
 0x19a   :  { %2245 = vtanh.f32 %v1136_v26  ;;  %v1006_v47 = vpop.f32.mrf.mxu0 }
 0x19b   :  { %v2240_v6 = vpop.eup %2239  ;;  %v1141_v50 = vpop.f32.mrf.mxu1  ;;  %v1007_v42 = vadd.f32 %v1006_v47, %v828_v62 }
 0x19c   :  { %v1142_v1 = vadd.f32 %v1141_v50, %v995_v24  ;;  %v1179_v34 = vmul.f32 %v2240_v6, %v3145_v9  ;;  %v2154_v45 = vpop.f32.mrf.mxu0 }
 0x19d   :  { %v2213_v61 = vpop.f32.mrf.mxu1  ;;  %v3231_v45 = vsub.s32 2, %v3176_v7 }
 0x19e   :  { %2247 = vtanh.f32 %v1142_v1  ;;  %1194 = vadd.xlane.f32.xlu0 %v1179_v34  ;;  %v3225_v1 = vsub.s32 0, %v3176_v7  ;;  %v3228_v34 = vsub.s32 1, %v3176_v7 }
 0x19f   :  { %v2242_v20 = vpop.eup %2241  ;;  %v1147_v38 = vpop.f32.mrf.mxu1 }
 0x1a0   :  { %v1148_v37 = vadd.f32 %v1147_v38, %v1001_v56  ;;  %v1180_v36 = vmul.f32 %v2242_v20, %v3145_v9  ;;  %v1307_v20 = vsub.s32 3, %v3176_v7 }
 0x1a1   :  { %v2216_v14 = vpop.f32.mrf.mxu1 }
 0x1a2   :  { %2249 = vtanh.f32 %v1148_v37  ;;  %1196 = vadd.xlane.f32.xlu1 %v1180_v36  ;;  %v1311_v36 = vsub.s32 4, %v3176_v7 }
 0x1a3   :  { %v2244_v3 = vpop.eup %2243  ;;  %v1153_v48 = vpop.f32.mrf.mxu1 }
 0x1a4   :  { %v1154_v29 = vadd.f32 %v1153_v48, %v1007_v42  ;;  %v1181_v39 = vmul.f32 %v2244_v3, %v3145_v9 }
 0x1a5   :  { %v2219_v25 = vpop.f32.mrf.mxu1 }
 0x1a6   :  { %2251 = vtanh.f32 %v1154_v29  ;;  %1198 = vadd.xlane.f32.xlu0 %v1181_v39  ;;  %v1315_v29 = vsub.s32 5, %v3176_v7 }
 0x1a7   :  { %v2246_v52 = vpop.eup %2245 }
 0x1a8   :  { %v1182_v40 = vmul.f32 %v2246_v52, %v3145_v9 }
 0x1aa   :  { %1200 = vadd.xlane.f32.xlu1 %v1182_v40 }
 0x1ab   :  { %v2248_v5 = vpop.eup %2247 }
 0x1ac   :  { %v1183_v60 = vmul.f32 %v2248_v5, %v3145_v9 }
 0x1ae   :  { %1202 = vadd.xlane.f32.xlu0 %v1183_v60  ;;  %v1319_v60 = vsub.s32 6, %v3176_v7 }
 0x1af   :  { %v2250_v59 = vpop.eup %2249 }
 0x1b0   :  { %v1184_v4 = vmul.f32 %v2250_v59, %v3145_v9 }
 0x1b2   :  { %1204 = vadd.xlane.f32.xlu1 %v1184_v4 }
 0x1b3   :  { %v2252_v44 = vpop.eup %2251 }
 0x1b4   :  { %v1185_v15 = vmul.f32 %v2252_v44, %v3145_v9 }
 0x1b6   :  { %1206 = vadd.xlane.f32.xlu0 %v1185_v15 }
 0x216   :  { %v1187_v16 = vpop.xlane.xlu0 %1186 }
 0x217   :  { %v1224_v28 = vrot.slane %v1187_v16, %v3181_v21 }
 0x21a   :  { %v1189_v19 = vpop.xlane.xlu0 %1188 }
 0x21b   :  { %v1228_v54 = vrot.slane %v1189_v19, %v3181_v21 }
 0x21d   :  { %v1266_v46 = vsel %vm1265_vm1, %v1228_v54, %v1224_v28 }
 0x21e   :  { %v1191_v10 = vpop.xlane.xlu1 %1190 }
 0x21f   :  { %v1232_v9 = vrot.slane %v1191_v10, %v3181_v21 }
 0x221   :  { %v1268_v58 = vsel %vm1267_vm2, %v1232_v9, %v1266_v46 }
 0x222   :  { %v3178_v17 = vpop.xlane.xlu1 %1192 }
 0x223   :  { %v1236_v43 = vrot.slane %v3178_v17, %v3181_v21 }
 0x225   :  { %v1270_v51 = vsel %vm1269_vm3, %v1236_v43, %v1268_v58 }
 0x227   :  { %v3183_v22 = vpop.xlane.xlu0 %1194 }
 0x228   :  { %v1240_v49 = vrot.slane %v3183_v22, %v3181_v21 }
 0x22a   :  { %v1272_v8 = vsel %vm1271_vm4, %v1240_v49, %v1270_v51 }
 0x22b   :  { %v3187_v27 = vpop.xlane.xlu1 %1196 }
 0x22c   :  { %v1244_v55 = vrot.slane %v3187_v27, %v3181_v21 }
 0x22e   :  { %v1274_v63 = vsel %vm1273_vm5, %v1244_v55, %v1272_v8 }
 0x22f   :  { %v3194_v41 = vpop.xlane.xlu0 %1198 }
 0x230   :  { %v1248_v2 = vrot.slane %v3194_v41, %v3181_v21 }
 0x232   :  { %v1276_v53 = vsel %vm1275_vm6, %v1248_v2, %v1274_v63 }
 0x233   :  { %v3204_v12 = vpop.xlane.xlu1 %1200 }
 0x234   :  { %v1252_v13 = vrot.slane %v3204_v12, %v3181_v21 }
 0x236   :  { %v1278_v32 = vsel %vm1277_vm7, %v1252_v13, %v1276_v53 }
 0x237   :  { %v1284_v35 = vsel %vm1283_vm8, %v1278_v32, -inf  ;;  %v3212_v26 = vpop.xlane.xlu0 %1202 }
 0x238   :  { %1285 = vmax.xlane.f32.xlu1 %v1284_v35  ;;  %v1256_v33 = vrot.slane %v3212_v26, %v3181_v21 }
 0x23b   :  { %v3214_v0 = vpop.xlane.xlu1 %1204 }
 0x23c   :  { %v1260_v31 = vrot.slane %v3214_v0, %v3181_v21 }
 0x23e   :  { %v1279_v6 = vsel %vm1265_vm1, %v1260_v31, %v1256_v33 }
 0x23f   :  { %v1207_v23 = vpop.xlane.xlu0 %1206 }
 0x240   :  { %v1264_v24 = vrot.slane %v1207_v23, %v3181_v21 }
 0x242   :  { %v1280_v47 = vsel %vm1267_vm2, %v1264_v24, %v1279_v6 }
 0x243   :  { %v1288_v50 = vsel %vm1287_vm9, %v1280_v47, -inf }
 0x244   :  { %1289 = vmax.xlane.f32.xlu0 %v1288_v50 }
 0x2c1   :  { %v1286_v61 = vpop.xlane.xlu1 %1285 }
 0x2c2   :  { %v1296_v30 = vrot.slane %v1286_v61, %v3225_v1  ;;  %v1300_v56 = vrot.slane %v1286_v61, %v3228_v34  ;;  %v1304_v38 = vrot.slane %v1286_v61, %v3231_v45  ;;  %v1308_v14 = vrot.slane %v1286_v61, %v1307_v20 }
 0x2c3   :  { %v1312_v39 = vrot.slane %v1286_v61, %v1311_v36  ;;  %v1316_v4 = vrot.slane %v1286_v61, %v1315_v29 }
 0x2c4   :  { %v1348_v62 = vsub.f32 %v1187_v16, %v1296_v30  ;;  %v1349_v37 = vsub.f32 %v1189_v19, %v1300_v56  ;;  %v1350_v42 = vsub.f32 %v1191_v10, %v1304_v38  ;;  %v1351_v25 = vsub.f32 %v3178_v17, %v1308_v14 }
 0x2c5   :  { %v1352_v44 = vsub.f32 %v3183_v22, %v1312_v39  ;;  %v1320_v10 = vrot.slane %v1286_v61, %v1319_v60  ;;  %v1353_v11 = vsub.f32 %v3187_v27, %v1316_v4  ;;  %v1324_v17 = vrot.slane %v1286_v61, %v1323_v18 }
 0x2c6   :  { %v1359_v3 = vmul.f32 1.442695, %v1348_v62  ;;  %v1361_v48 = vmul.f32 1.442695, %v1349_v37  ;;  %v1363_v52 = vmul.f32 1.442695, %v1350_v42 }
 0x2c7   :  { %v1365_v15 = vmul.f32 1.442695, %v1351_v25  ;;  %v1367_v19 = vmul.f32 1.442695, %v1352_v44  ;;  %v1354_v54 = vsub.f32 %v3194_v41, %v1320_v10  ;;  %v1369_v22 = vmul.f32 1.442695, %v1353_v11 }
 0x2c8   :  { %2253 = vpow2.f32 %v1359_v3  ;;  %v1355_v27 = vsub.f32 %v3204_v12, %v1324_v17 }
 0x2c9   :  { %2255 = vpow2.f32 %v1361_v48  ;;  %v1371_v43 = vmul.f32 1.442695, %v1354_v54 }
 0x2ca   :  { %2257 = vpow2.f32 %v1363_v52  ;;  %v1373_v41 = vmul.f32 1.442695, %v1355_v27 }
 0x2cb   :  { %2259 = vpow2.f32 %v1365_v15 }
 0x2cd   :  { %v1290_v40 = vpop.xlane.xlu0 %1289 }
 0x2ce   :  { %v1336_v5 = vrot.slane %v1290_v40, %v3231_v45  ;;  %v1328_v49 = vrot.slane %v1290_v40, %v3225_v1  ;;  %v1332_v55 = vrot.slane %v1290_v40, %v3228_v34 }
 0x2d0   :  { %v1358_v59 = vsub.f32 %v1207_v23, %v1336_v5  ;;  %v1356_v58 = vsub.f32 %v3212_v26, %v1328_v49  ;;  %v1357_v8 = vsub.f32 %v3214_v0, %v1332_v55 }
 0x2d2   :  { %v1379_v16 = vmul.f32 1.442695, %v1358_v59  ;;  %v1375_v12 = vmul.f32 1.442695, %v1356_v58  ;;  %v1377_v63 = vmul.f32 1.442695, %v1357_v8 }
 0x2d4   :  { %2261 = vpow2.f32 %v1379_v16 }
 0x2d5   :  { %2263 = vpow2.f32 %v1367_v19  ;;  %v3256_v9 = vpop.eup %2253 }
 0x2d6   :  { %v3258_v28 = vpop.eup %2255  ;;  %1393 = vperm.xlu1 %2229, %v3256_v9   ;;  %2265 = vpow2.f32 %v1369_v22 }
 0x2d7   :  { %1396 = vperm.xlu0 %2230, %v3258_v28   ;;  %v3264_v46 = vpop.eup %2257  ;;  %2267 = vpow2.f32 %v1371_v43 }
 0x2d8   :  { %v3269_v2 = vpop.eup %2259  ;;  %2269 = vpow2.f32 %v1373_v41 }
 0x2d9   :  { %2271 = vpow2.f32 %v1375_v12 }
 0x2da   :  { %1399 = vperm.xlu1 %2229, %v3264_v46   ;;  %2273 = vpow2.f32 %v1377_v63 }
 0x2de   :  { %1402 = vperm.xlu1 %2229, %v3269_v2  }
 0x2e1   :  { %v2262_v51 = vpop.eup %2261 }
 0x2e2   :  { %1423 = vperm.xlu0 %2230, %v2262_v51   ;;  %v3273_v13 = vpop.eup %2263 }
 0x2e3   :  { %1405 = vperm.xlu1 %2229, %v3273_v13   ;;  %v3276_v53 = vpop.eup %2265 }
 0x2e4   :  { %v3279_v32 = vpop.eup %2267 }
 0x2e5   :  { %v3282_v35 = vpop.eup %2269 }
 0x2e6   :  { %v3285_v26 = vpop.eup %2271 }
 0x2e7   :  { %1408 = vperm.xlu1 %2229, %v3276_v53   ;;  %v3288_v0 = vpop.eup %2273 }
 0x2eb   :  { %1411 = vperm.xlu1 %2229, %v3279_v32  }
 0x2ef   :  { %1414 = vperm.xlu1 %2229, %v3282_v35  }
 0x2f3   :  { %1417 = vperm.xlu1 %2229, %v3285_v26  }
 0x2f7   :  { %1420 = vperm.xlu1 %2229, %v3288_v0  }
 0x351   :  { %v1394_v31 = vpop.permute.xlu1 %1393 }
 0x352   :  { %v1397_v6 = vpop.permute.xlu0 %1396  ;;  %v1428_v50 = vrot.slane %v1394_v31, %v3181_v21 }
 0x353   :  { %v1432_v57 = vrot.slane %v1397_v6, %v3181_v21 }
 0x355   :  { %v1400_v33 = vpop.permute.xlu1 %1399  ;;  %v1469_v62 = vsel %vm1265_vm1, %v1432_v57, %v1428_v50 }
 0x356   :  { %v1436_v61 = vrot.slane %v1400_v33, %v3181_v21 }
 0x358   :  { %v1470_v14 = vsel %vm1267_vm2, %v1436_v61, %v1469_v62 }
 0x359   :  { %v1403_v23 = vpop.permute.xlu1 %1402 }
 0x35a   :  { %v1440_v30 = vrot.slane %v1403_v23, %v3181_v21 }
 0x35c   :  { %v1471_v3 = vsel %vm1269_vm3, %v1440_v30, %v1470_v14 }
 0x35d   :  { %v1424_v44 = vpop.permute.xlu0 %1423 }
 0x35e   :  { %v1406_v24 = vpop.permute.xlu1 %1405  ;;  %v1468_v11 = vrot.slane %v1424_v44, %v3181_v21 }
 0x35f   :  { %v1444_v56 = vrot.slane %v1406_v24, %v3181_v21 }
 0x361   :  { %v1472_v48 = vsel %vm1271_vm4, %v1444_v56, %v1471_v3  ;;  %v2295_v56 = vld [vmem:[#allocation8] sm:$0xff] }
 0x362   :  { %v1409_v47 = vpop.permute.xlu1 %1408 }
 0x363   :  { %v1448_v37 = vrot.slane %v1409_v47, %v3181_v21 }
 0x365   :  { %v1473_v25 = vsel %vm1273_vm5, %v1448_v37, %v1472_v48 }
 0x366   :  { %v1412_v38 = vpop.permute.xlu1 %1411 }
 0x367   :  { %v1452_v42 = vrot.slane %v1412_v38, %v3181_v21 }
 0x369   :  { %v1474_v40 = vsel %vm1275_vm6, %v1452_v42, %v1473_v25 }
 0x36a   :  { %v1415_v39 = vpop.permute.xlu1 %1414 }
 0x36b   :  { %v1456_v52 = vrot.slane %v1415_v39, %v3181_v21  ;;  %v2298_v39 = vld [vmem:[#allocation5 + $0x18] sm:$0xff] }
 0x36d   :  { %v1475_v5 = vsel %vm1277_vm7, %v1456_v52, %v1474_v40  ;;  %v2299_v52 = vld [vmem:[#allocation5 + $0x20] sm:$0xff] }
 0x36e   :  { %v1418_v59 = vpop.permute.xlu1 %1417  ;;  %v1480_v4 = vsel %vm1283_vm8, %v1475_v5, 0.0 }
 0x36f   :  { %1481 = vadd.xlane.f32.xlu1 %v1480_v4  ;;  %v1460_v16 = vrot.slane %v1418_v59, %v3181_v21 }
 0x372   :  { %v1421_v15 = vpop.permute.xlu1 %1420 }
 0x373   :  { %v1464_v10 = vrot.slane %v1421_v15, %v3181_v21  ;;  %v2300_v15 = vld [vmem:[#allocation5 + $0x28] sm:$0xff] }
 0x375   :  { %v1476_v19 = vsel %vm1265_vm1, %v1464_v10, %v1460_v16 }
 0x376   :  { %v1477_v17 = vsel %vm1267_vm2, %v1468_v11, %v1476_v19 }
 0x377   :  { %v1483_v54 = vsel %vm1287_vm9, %v1477_v17, 0.0 }
 0x378   :  { %1484 = vadd.xlane.f32.xlu0 %v1483_v54  ;;  %v2301_v54 = vld [vmem:[#allocation5 + $0x30] sm:$0xff] }
 0x3f8   :  { %v1482_v22 = vpop.xlane.xlu1 %1481 }
 0x3f9   :  { %v1495_v27 = vrot.slane %v1482_v22, %v3228_v34  ;;  %v1491_v43 = vrot.slane %v1482_v22, %v3225_v1  ;;  %v1499_v49 = vrot.slane %v1482_v22, %v3231_v45  ;;  %v1503_v41 = vrot.slane %v1482_v22, %v1307_v20 }
 0x3fa   :  { %v1507_v21 = vrot.slane %v1482_v22, %v1311_v36  ;;  %v1511_v55 = vrot.slane %v1482_v22, %v1315_v29  ;;  %v1515_v58 = vrot.slane %v1482_v22, %v1319_v60  ;;  %v1519_v45 = vrot.slane %v1482_v22, %v1323_v18 }
 0x3fb   :  { %2275 = vrcp.f32 %v1495_v27 }
 0x3fc   :  { %2277 = vrcp.f32 %v1491_v43 }
 0x3fd   :  { %2279 = vrcp.f32 %v1499_v49 }
 0x3fe   :  { %2281 = vrcp.f32 %v1503_v41 }
 0x3ff   :  { %2283 = vrcp.f32 %v1507_v21 }
 0x400   :  { %2285 = vrcp.f32 %v1511_v55 }
 0x401   :  { %v1485_v51 = vpop.xlane.xlu0 %1484  ;;  %2287 = vrcp.f32 %v1515_v58 }
 0x402   :  { %v1523_v20 = vrot.slane %v1485_v51, %v3225_v1  ;;  %v1527_v8 = vrot.slane %v1485_v51, %v3228_v34  ;;  %2289 = vrcp.f32 %v1519_v45 }
 0x404   :  { %2291 = vrcp.f32 %v1523_v20 }
 0x405   :  { %2293 = vrcp.f32 %v1527_v8 }
 0x408   :  { %v2276_v36 = vpop.eup %2275 }
 0x409   :  { %v2278_v12 = vpop.eup %2277  ;;  %v1541_v29 = vmul.f32 %v2276_v36, %v3258_v28 }
 0x40a   :  { %v2280_v63 = vpop.eup %2279  ;;  %v1539_v60 = vmul.f32 %v2278_v12, %v3256_v9 }
 0x40b   :  { %v2282_v31 = vpop.eup %2281  ;;  %1565 = vperm.xlu1 %2229, %v1541_v29   ;;  %v1543_v7 = vmul.f32 %v2280_v63, %v3264_v46 }
 0x40c   :  { %1560 = vperm.xlu0 %2230, %v1539_v60   ;;  %v2284_v18 = vpop.eup %2283  ;;  %v1545_v1 = vmul.f32 %v2282_v31, %v3269_v2 }
 0x40d   :  { %v2286_v33 = vpop.eup %2285  ;;  %v1547_v34 = vmul.f32 %v2284_v18, %v3273_v13 }
 0x40e   :  { %v2288_v23 = vpop.eup %2287  ;;  %v1549_v28 = vmul.f32 %v2286_v33, %v3276_v53 }
 0x40f   :  { %1570 = vperm.xlu1 %2229, %v1543_v7   ;;  %v2290_v24 = vpop.eup %2289  ;;  %v1551_v9 = vmul.f32 %v2288_v23, %v3279_v32  ;;  %v2296_v32 = vld [vmem:[#allocation8 + $0x8] sm:$0xff] }
 0x410   :  { %1575 = vperm.xlu0 %2230, %v1545_v1   ;;  %v1553_v47 = vmul.f32 %v2290_v24, %v3282_v35  ;;  %v2297_v35 = vld [vmem:[#allocation8 + $0x10] sm:$0xff] }
 0x411   :  { %v2292_v6 = vpop.eup %2291 }
 0x412   :  { %v2294_v46 = vpop.eup %2293  ;;  %v1555_v2 = vmul.f32 %v2292_v6, %v3285_v26 }
 0x413   :  { %1580 = vperm.xlu1 %2229, %v1547_v34   ;;  %v1557_v50 = vmul.f32 %v2294_v46, %v3288_v0 }
 0x414   :  { %1585 = vperm.xlu0 %2230, %v1549_v28  }
 0x417   :  { %1590 = vperm.xlu1 %2229, %v1551_v9  }
 0x418   :  { %1595 = vperm.xlu0 %2230, %v1553_v47  }
 0x41b   :  { %1600 = vperm.xlu1 %2229, %v1555_v2  }
 0x41c   :  { %1605 = vperm.xlu0 %2230, %v1557_v50  }
 0x486   :  { %v1566_v13 = vpop.permute.xlu1 %1565 }
 0x487   :  { %v1561_v57 = vpop.permute.xlu0 %1560 }
 0x48a   :  { %v1571_v53 = vpop.permute.xlu1 %1570 }
 0x48b   :  { %v1576_v61 = vpop.permute.xlu0 %1575 }
 0x48c   :  { %v1611_v38 = vmul.f32 %v2295_v56, %v1576_v61 }
 0x48e   :  { %v1581_v30 = vpop.permute.xlu1 %1580 }
 0x48f   :  { %v1612_v62 = vmul.f32 %v2296_v32, %v1581_v30  ;;  %v1586_v37 = vpop.permute.xlu0 %1585 }
 0x490   :  { %v1613_v14 = vmul.f32 %v2297_v35, %v1586_v37 }
 0x491   :  { %v1621_v42 = vadd.f32 %v1612_v62, %v1611_v38 }
 0x492   :  { %v1591_v3 = vpop.permute.xlu1 %1590  ;;  %v1622_v48 = vadd.f32 %v1613_v14, %v1612_v62 }
 0x493   :  { %v1629_v26 = vadd.f32 %v1621_v42, %v1613_v14  ;;  %v1614_v0 = vmul.f32 %v2298_v39, %v1591_v3  ;;  %v1596_v25 = vpop.permute.xlu0 %1595 }
 0x494   :  { %v1615_v40 = vmul.f32 %v2299_v52, %v1596_v25 }
 0x495   :  { %1637 = vst [vmem:[#allocation8 + $0x18] sm:$0xff] %v1629_v26  ;;  %v1623_v5 = vadd.f32 %v1614_v0, %v1613_v14  ;;  %v1630_v59 = vadd.f32 %v1622_v48, %v1614_v0 }
 0x496   :  { %v1601_v4 = vpop.permute.xlu1 %1600  ;;  %v1624_v10 = vadd.f32 %v1615_v40, %v1614_v0 }
 0x497   :  { %1638 = vst [vmem:[#allocation8 + $0x20] sm:$0xff] %v1630_v59  ;;  %v1631_v44 = vadd.f32 %v1623_v5, %v1615_v40  ;;  %v1616_v16 = vmul.f32 %v2300_v15, %v1601_v4  ;;  %v1606_v11 = vpop.permute.xlu0 %1605 }
 0x498   :  { %v1617_v22 = vmul.f32 %v2301_v54, %v1606_v11 }
 0x499   :  { %1639 = vst [vmem:[#allocation8 + $0x28] sm:$0xff] %v1631_v44  ;;  %v1625_v19 = vadd.f32 %v1616_v16, %v1615_v40  ;;  %v1632_v17 = vadd.f32 %v1624_v10, %v1616_v16 }
 0x49b   :  { %1640 = vst [vmem:[#allocation8 + $0x30] sm:$0xff] %v1632_v17  ;;  %v1633_v27 = vadd.f32 %v1625_v19, %v1617_v22 }
 0x49d   :  { %1641 = vst [vmem:[#allocation8 + $0x38] sm:$0xff] %v1633_v27 }
 0x49e   :  { %2373 = shalt.err (!%p2370_p5)
}
 0x49f   :  { %1660 = dma.vmem_to_hbm [thread:$0]  %s1655_s5, 1024, %s3348_s4, [#allocation4], %s2390_s20, %s2390_s20, %s2391_s21  }
 0x4a0   :  { %2386 = dma.done.wait [#allocation4], 1024  }
 0x4a1   :  { %2387 = vsyncadd [#allocation4], 4294966272 }
 0x4a2   :  { %1664 = vsyncpa [#allocation3], 1 }
 0x4a3   :  { %1665 = vsyncpa [#allocation6], 1 }
 0x4a4   :  { %1666 = vsyncpa [#allocation4], 1 }

</bundles_post_ra>
